<compile_context>
chip_gen: v5e
topology: v5e:2x2
jax: 0.10.0
libtpu: 0.0.40
codegen_flags: <defaults>
</compile_context>

<pallas_src>
import functools
import numpy as np
import jax
import jax.numpy as jnp
from jax.experimental import pallas as pl
from jax.experimental.pallas import tpu as pltpu

EPS = 1e-12
# Feed-forward GEMMs (gates_proj, heads): bf16 weights/activations, f32 accum.
FF_DTYPE = jnp.bfloat16
# Recurrent matmul / state stay f32 (rounding would compound over L steps).
RECUR_DTYPE = jnp.float32

_VMEM_LIMIT_CACHE = None


def _vmem_limit_bytes():
    """Generation-aware VMEM limit: ~80% of physical, capped at 100 MiB."""
    global _VMEM_LIMIT_CACHE
    if _VMEM_LIMIT_CACHE is None:
        try:
            cap = int(getattr(pltpu.get_tpu_info(), "vmem_capacity_bytes", 64 << 20))
        except Exception:
            cap = 64 << 20
        _VMEM_LIMIT_CACHE = max(32 << 20, min((cap * 4) // 5, 100 << 20))
    return _VMEM_LIMIT_CACHE


def _cparams(dims):
    return pltpu.CompilerParams(dimension_semantics=dims,
                                vmem_limit_bytes=_vmem_limit_bytes())


def _row_tile(n, cap=4096):
    """Large row tile (amortize ~0.35us/grid-step); prefer a divisor of n."""
    if n <= cap:
        return n
    for cand in range(cap, 7, -8):
        if n % cand == 0:
            return cand
    return cap


def _lstm_batch_tile(B):
    """Batch tile: multiple of 8, <=128, >=2 grid steps when B allows
    (so v7x's second TensorCore gets half the serial recurrence)."""
    if B <= 8:
        return B
    tb = min(128, max(8, (B // 2) // 8 * 8))
    for cand in range(tb, 7, -8):
        if B % cand == 0:
            return cand
    return tb


def _lstm_time_chunk(L, TB, H):
    """Cap the (TC, TB, 4H) f32 gx block at ~4 MiB (it is double-buffered)."""
    per_step = TB * 4 * H * 4
    tc = max(1, (4 << 20) // max(1, per_step))
    tc = min(tc, L)
    for cand in range(tc, 0, -1):
        if L % cand == 0:
            return cand
    return tc


def _lstm_unroll(TB, H, TC):
    """Unroll bounded by vreg pressure: each unrolled step holds a (TB,4H)
    f32 gates temp (~TB*4H/1024 vregs of the 64-entry file)."""
    gates_vregs = max(1, (TB * 4 * H + 1023) // 1024)
    return max(1, min(8, 64 // gates_vregs, TC))


# ----------------------------- Pallas kernels ------------------------------

def gates_proj_kernel(x_ref, r_ref, wih_ref, b_ref, out_ref):
    """LSTM input projection for a (TN, 2E) row tile.

    e = [x*r, x*(1-r)] built in VMEM (r is 0/1 per row), then ONE stacked
    K=4E matmul against the full W_ih:  out = e @ W_ih + (b_ih + b_hh).
    """
    x = x_ref[...]                                   # (TN, 2E) bf16
    r = r_ref[...].astype(x.dtype)                   # (TN, 1), lane-broadcasts
    xr = x * r
    e = jnp.concatenate([xr, x - xr], axis=1)        # (TN, 4E) bf16
    out_ref[...] = (jnp.dot(e, wih_ref[...], preferred_element_type=jnp.float32)
                    + b_ref[...])


def lstm_kernel(gx_ref, whh_ref, h_out_ref, h_sc, c_sc, *, unroll):
    """LSTM recurrence for one (time-chunk, batch-tile) block.

    gx_ref    : (TC, TB, 4H)  precomputed x@W_ih + (b_ih + b_hh), time-major
    whh_ref   : (H, 4H)       f32
    h_out_ref : (TC, TB, H)
    h_sc/c_sc : (TB, H) VMEM scratch carrying state across time chunks.
    Inside the chunk the state lives in vregs (fori_loop carry); bias add and
    the input matmul were hoisted into gates_proj.
    PyTorch gate order i, f, g, o.
    # NOTE: for H a multiple of 128 the gate slices below are tile-aligned;
    # for smaller H (toy config) the relayouts are negligible.
    """
    tchunk = pl.program_id(1)
    TC, TB, H = h_out_ref.shape

    @pl.when(tchunk == 0)
    def _():
        h_sc[...] = jnp.zeros_like(h_sc)
        c_sc[...] = jnp.zeros_like(c_sc)

    whh = whh_ref[...]                               # hoisted, loop-invariant

    def step(t, carry):
        h, c = carry
        gates = gx_ref[t] + jnp.dot(h, whh, preferred_element_type=jnp.float32)
        i_g = jax.nn.sigmoid(gates[:, 0:H])
        f_g = jax.nn.sigmoid(gates[:, H:2 * H])
        g_g = jnp.tanh(gates[:, 2 * H:3 * H])
        o_g = jax.nn.sigmoid(gates[:, 3 * H:4 * H])
        c = f_g * c + i_g * g_g
        h = o_g * jnp.tanh(c)
        h_out_ref[t] = h
        return (h, c)

    h_f, c_f = jax.lax.fori_loop(0, TC, step, (h_sc[...], c_sc[...]),
                                 unroll=unroll)
    h_sc[...] = h_f
    c_sc[...] = c_f


def heads_kernel(h_ref, x_ref, w1h_ref, w1x_ref, b1_ref, w2_ref, b2_ref,
                 w3_ref, b3_ref, two_c_ref, out_ref):
    """Fused fc / q_nn / s_nn heads + counterfactual 'sum' fusion on a row tile.

    Column layout of the padded block weights (built in pack_params):
      layer 1 (128 cols): [ fc1 (64) | q1 (32) | s_logit (2) | pad ]
      layer 2 (128 cols): [ q2 (64)  | z_k (2) | pad ]        (rows padded to 128)
      layer 3 (2 cols)  : q_logit                              (rows padded to 128)
    The full 128-lane ReLU output feeds each next matmul (zero weight rows make
    the padded / un-ReLU'd columns contribute nothing), so no non-aligned lane
    slices reach the MXU.  Output slab (TN, 8): [q_logit | z_qks | z_q | core].
    """
    h = h_ref[...]
    x = x_ref[...]

    pre1 = (jnp.dot(h, w1h_ref[...], preferred_element_type=jnp.float32)
            + jnp.dot(x, w1x_ref[...], preferred_element_type=jnp.float32)
            + b1_ref[...])                                       # (T, 128) f32
    s_logit = pre1[:, 96:98]
    a1 = jnp.maximum(pre1, 0.0).astype(w2_ref.dtype)             # full 128 lanes

    pre2 = (jnp.dot(a1, w2_ref[...], preferred_element_type=jnp.float32)
            + b2_ref[...])                                       # (T, 128) f32
    z_k = pre2[:, 64:66]
    a2 = jnp.maximum(pre2, 0.0).astype(w3_ref.dtype)             # full 128 lanes

    q_logit = (jnp.dot(a2, w3_ref[...], preferred_element_type=jnp.float32)
               + b3_ref[...])                                    # (T, 2)

    # fusion_mode == 'sum': z = log(sigmoid(z_k + z_q + z_s) + eps)
    z_qks = jnp.log(jax.nn.sigmoid(z_k + q_logit + s_logit) + EPS)
    # q_fact only: z_k = z_s = constant  ->  z = log(sigmoid(q_logit + 2c) + eps)
    z_q = jnp.log(jax.nn.sigmoid(q_logit + two_c_ref[...]) + EPS)

    out_ref[...] = jnp.concatenate([q_logit, z_qks, z_q, z_qks - z_q], axis=1)


# ------------------------------- wrappers -----------------------------------

def run_gates_proj(x2, r2, wih, b2d):
    N, E2 = x2.shape
    E4, H4 = wih.shape
    TN = _row_tile(N)
    return pl.pallas_call(
        gates_proj_kernel,
        out_shape=jax.ShapeDtypeStruct((N, H4), jnp.float32),
        grid=(pl.cdiv(N, TN),),
        in_specs=[pl.BlockSpec((TN, E2), lambda i: (i, 0)),
                  pl.BlockSpec((TN, 1), lambda i: (i, 0)),
                  pl.BlockSpec((E4, H4), lambda i: (0, 0)),
                  pl.BlockSpec((1, H4), lambda i: (0, 0))],
        out_specs=pl.BlockSpec((TN, H4), lambda i: (i, 0)),
        compiler_params=_cparams(("parallel",)),
    )(x2, r2, wih, b2d)


def run_lstm(gx_tm, whh):
    L, B, H4 = gx_tm.shape
    H = whh.shape[0]
    TB = _lstm_batch_tile(B)
    TC = _lstm_time_chunk(L, TB, H)
    unroll = _lstm_unroll(TB, H, TC)
    kernel = functools.partial(lstm_kernel, unroll=unroll)
    return pl.pallas_call(
        kernel,
        out_shape=jax.ShapeDtypeStruct((L, B, H), jnp.float32),
        grid=(pl.cdiv(B, TB), pl.cdiv(L, TC)),
        in_specs=[pl.BlockSpec((TC, TB, H4), lambda b, t: (t, b, 0)),
                  pl.BlockSpec((H, H4), lambda b, t: (0, 0))],
        out_specs=pl.BlockSpec((TC, TB, H), lambda b, t: (t, b, 0)),
        scratch_shapes=[pltpu.VMEM((TB, H), jnp.float32),
                        pltpu.VMEM((TB, H), jnp.float32)],
        compiler_params=_cparams(("parallel", "arbitrary")),
    )(gx_tm, whh)


def run_heads(h2, x2, Pk):
    N, H = h2.shape
    E2 = x2.shape[1]
    TN = _row_tile(N)
    return pl.pallas_call(
        heads_kernel,
        out_shape=jax.ShapeDtypeStruct((N, 8), jnp.float32),
        grid=(pl.cdiv(N, TN),),
        in_specs=[pl.BlockSpec((TN, H), lambda i: (i, 0)),
                  pl.BlockSpec((TN, E2), lambda i: (i, 0)),
                  pl.BlockSpec((H, 128), lambda i: (0, 0)),
                  pl.BlockSpec((E2, 128), lambda i: (0, 0)),
                  pl.BlockSpec((1, 128), lambda i: (0, 0)),
                  pl.BlockSpec((128, 128), lambda i: (0, 0)),
                  pl.BlockSpec((1, 128), lambda i: (0, 0)),
                  pl.BlockSpec((128, 2), lambda i: (0, 0)),
                  pl.BlockSpec((1, 2), lambda i: (0, 0)),
                  pl.BlockSpec((1, 2), lambda i: (0, 0))],
        out_specs=pl.BlockSpec((TN, 8), lambda i: (i, 0)),
        compiler_params=_cparams(("parallel",)),
    )(h2, x2, Pk['w1h_blk'], Pk['w1x_blk'], Pk['b1_blk'],
      Pk['w2_blk'], Pk['b2_blk'], Pk['q_w3_blk'], Pk['q_b3_2d'], Pk['two_const'])


# --------------------------- model glue (on device) -------------------------

def multi_skills_embedding(c_table, c):
    """c: (..., K) with -1 padding; c_emb has padding_idx=0 (row 0 zeros)."""
    emb_sum = c_table[c + 1].sum(-2)
    cnt = (c >= 0).sum(-1, keepdims=True)
    cnt = jnp.where(cnt == 0, 1, cnt).astype(jnp.float32)
    return emb_sum / cnt


@jax.jit
def dkt_core_device(Pk, q, c, r, qshft, cshft, rshft, sm):
    ques_table = Pk['ques_emb']
    c_table = Pk['c_emb']
    B, L = q.shape
    E = ques_table.shape[1]
    H = Pk['w_hh'].shape[0]
    N = B * L

    # Time-major embeddings: only the tiny index arrays are transposed; the big
    # activation tensors are produced directly in (L, B, .) layout.
    q_t, qshft_t = q.T, qshft.T
    c_t = jnp.transpose(c, (1, 0, 2))
    cshft_t = jnp.transpose(cshft, (1, 0, 2))
    r_t = r.T.astype(jnp.float32)

    x_tm = jnp.concatenate([ques_table[q_t],
                            multi_skills_embedding(c_table, c_t)], -1)      # (L,B,2E)
    xshft_tm = jnp.concatenate([ques_table[qshft_t],
                                multi_skills_embedding(c_table, cshft_t)], -1)

    # 1) hoisted LSTM input projection (one stacked bf16 GEMM, gate fused in)
    gx = run_gates_proj(x_tm.reshape(N, 2 * E).astype(FF_DTYPE),
                        r_t.reshape(N, 1),
                        Pk['w_ih'], Pk['b_lstm_2d'])
    gx_tm = gx.reshape(L, B, 4 * H)

    # 2) LSTM recurrence (batch-parallel x time-chunked grid, state in vregs/scratch)
    h_tm = run_lstm(gx_tm, Pk['w_hh'])                                      # (L,B,H)

    # 3) fused heads + counterfactual fusion (row-parallel grid, packed output)
    # TODO(synk): the reference detaches xshft / h before q_nn / s_nn; forward
    # values are identical, gradient stopping inside the kernel is not modeled.
    packed = run_heads(h_tm.reshape(N, H).astype(FF_DTYPE),
                       xshft_tm.reshape(N, 2 * E).astype(FF_DTYPE), Pk)
    packed = jnp.transpose(packed.reshape(L, B, 8), (1, 0, 2))              # tiny
    q_logit = packed[..., 0:2]
    z_qks = packed[..., 2:4]
    z_q = packed[..., 4:6]
    core = packed[..., 6:8]
    z_nde = jax.lax.stop_gradient(z_q)     # reference: all z_nde inputs detached

    # Mask-weighted CE + KL losses: static shapes, entirely on device.
    labels = rshft.astype(jnp.int32)
    mask = sm.astype(jnp.float32)
    cnt = jnp.maximum(mask.sum(), 1.0)

    def masked_ce(logits):
        lp = jax.nn.log_softmax(logits, -1)
        pick = jnp.take_along_axis(lp, labels[..., None], -1)[..., 0]
        return (-pick * mask).sum() / cnt

    loss_cls = masked_ce(z_qks) + masked_ce(q_logit)
    p_te = jax.lax.stop_gradient(jax.nn.softmax(z_qks, -1))
    loss_kl = ((-p_te * jax.nn.log_softmax(z_nde, -1)).sum(-1) * mask).sum() / cnt
    loss = loss_cls + loss_kl

    core_prob = jax.nn.softmax(core, -1)[..., 1]                            # (B,L)
    return loss, core_prob, z_qks, core


def dkt_core_forward(Pk, data, num_q):
    loss, core_prob, z_qks, core = dkt_core_device(
        Pk, data['qseqs'], data['cseqs'], data['rseqs'],
        data['shft_qseqs'], data['shft_cseqs'], data['shft_rseqs'],
        data['smasks'])

    # TODO(synk): torch.masked_select has a data-dependent output shape; the final
    # gather of the (small) per-position predictions stays as host numpy glue.
    m = np.asarray(data['smasks']).astype(bool)
    t = np.asarray(data['shft_rseqs'])[m].astype(np.int64)
    q_sel = np.asarray(data['shft_qseqs'])[m].astype(np.int64)
    core_p = np.asarray(core_prob)[m]
    return (loss, core_p, t, q_sel + num_q * t), (z_qks, core)


# --------------------------- parameter init / packing ------------------------

def init_params(key, num_c, num_q, E):
    """Logical parameters (PyTorch module layout, weights stored (in, out))."""
    ks = jax.random.split(key, 16)
    H = E

    def n(k, shape, s=0.1):
        return (s * jax.random.normal(k, shape)).astype(jnp.float32)

    P = {}
    P['ques_emb'] = n(ks[0], (num_q, E))                     # Embedding(num_q, E)
    P['c_emb'] = n(ks[1], (num_c + 1, E)).at[0].set(0.0)     # padding_idx=0
    P['w_ih'] = n(ks[2], (4 * E, 4 * H))                     # LSTM, gate order i,f,g,o
    P['w_hh'] = n(ks[3], (H, 4 * H))
    P['b_lstm'] = n(ks[4], (4 * H,))                         # b_ih + b_hh
    P['fc_w1'] = n(ks[5], (3 * E, 64))                       # fc.0, input = [h | xshft]
    P['fc_b1'] = n(ks[6], (64,))
    P['fc_w2'] = n(ks[7], (64, 2))
    P['fc_b2'] = n(ks[8], (2,))
    P['q_w1'] = n(ks[9], (2 * E, 32))
    P['q_b1'] = n(ks[10], (32,))
    P['q_w2'] = n(ks[11], (32, 64))
    P['q_b2'] = n(ks[12], (64,))
    P['q_w3'] = n(ks[13], (64, 2))
    P['q_b3'] = n(ks[14], (2,))
    P['s_w'] = n(ks[15], (E, 2))
    P['s_b'] = jnp.zeros((2,), jnp.float32)
    P['constant'] = jnp.float32(0.0)                         # Parameter(0.0)
    return P


def pack_params(P):
    """One-time repack into kernel-ready block weights / MXU dtypes."""
    E = P['ques_emb'].shape[1]
    H = P['w_hh'].shape[0]          # == E in this module
    f32 = jnp.float32
    Pk = {'ques_emb': P['ques_emb'], 'c_emb': P['c_emb']}

    # LSTM: whole (4E, 4H) W_ih in bf16 (single stacked GEMM in gates_proj);
    # W_hh stays f32 (serial recurrence, no compounding rounding).
    Pk['w_ih'] = P['w_ih'].astype(FF_DTYPE)
    Pk['w_hh'] = P['w_hh'].astype(RECUR_DTYPE)
    Pk['b_lstm_2d'] = P['b_lstm'].reshape(1, -1).astype(f32)

    # Heads layer 1 block: columns = [fc1(64) | q1(32) | s_logit(2) | pad].
    w1h = jnp.zeros((H, 128), f32)
    w1h = w1h.at[:, 0:64].set(P['fc_w1'][:H])                # fc consumes h ...
    w1h = w1h.at[:, 96:98].set(P['s_w'])                     # s_nn consumes h
    w1x = jnp.zeros((2 * E, 128), f32)
    w1x = w1x.at[:, 0:64].set(P['fc_w1'][H:])                # ... and xshft
    w1x = w1x.at[:, 64:96].set(P['q_w1'])                    # q_nn consumes xshft
    b1 = jnp.zeros((1, 128), f32)
    b1 = b1.at[0, 0:64].set(P['fc_b1'])
    b1 = b1.at[0, 64:96].set(P['q_b1'])
    b1 = b1.at[0, 96:98].set(P['s_b'])

    # Heads layer 2 block: 128 rows (pad so the full 128-lane ReLU output can
    # feed the MXU without narrow slices), columns = [q2(64) | z_k(2) | pad].
    w2 = jnp.zeros((128, 128), f32)
    w2 = w2.at[64:96, 0:64].set(P['q_w2'])
    w2 = w2.at[0:64, 64:66].set(P['fc_w2'])
    b2 = jnp.zeros((1, 128), f32)
    b2 = b2.at[0, 0:64].set(P['q_b2'])
    b2 = b2.at[0, 64:66].set(P['fc_b2'])

    # Heads layer 3: q_w3 padded to 128 rows (rows 64..127 zero).
    w3 = jnp.zeros((128, 2), f32).at[0:64, :].set(P['q_w3'])

    Pk['w1h_blk'] = w1h.astype(FF_DTYPE)
    Pk['w1x_blk'] = w1x.astype(FF_DTYPE)
    Pk['b1_blk'] = b1
    Pk['w2_blk'] = w2.astype(FF_DTYPE)
    Pk['b2_blk'] = b2
    Pk['q_w3_blk'] = w3.astype(FF_DTYPE)
    Pk['q_b3_2d'] = P['q_b3'].reshape(1, 2).astype(f32)
    Pk['two_const'] = (jnp.ones((1, 2), f32) * (2.0 * P['constant'])).astype(f32)
    return Pk


# --------------------------------- main --------------------------------------

if __name__ == "__main__":
    num_c, num_q, E = 10, 20, 32
    B, L, K = 2, 8, 3

    P = init_params(jax.random.PRNGKey(0), num_c, num_q, E)
    Pk = pack_params(P)

    kq, kc, kr, kpad = jax.random.split(jax.random.PRNGKey(0), 4)
    q_full = jax.random.randint(kq, (B, L + 1), 0, num_q)
    c_full = jax.random.randint(kc, (B, L + 1, K), 0, num_c)
    pad = jax.random.bernoulli(kpad, 0.4, (B, L + 1, K)).at[..., 0].set(False)
    c_full = jnp.where(pad, -1, c_full)
    r_full = jax.random.randint(kr, (B, L + 1), 0, 2)

    data = dict(
        qseqs=q_full[:, :L], cseqs=c_full[:, :L], rseqs=r_full[:, :L],
        tseqs=jnp.zeros((B, L), jnp.int32),
        shft_qseqs=q_full[:, 1:], shft_cseqs=c_full[:, 1:],
        shft_rseqs=r_full[:, 1:], shft_tseqs=jnp.zeros((B, L), jnp.int32),
        masks=jnp.ones((B, L), bool),
        smasks=jnp.ones((B, L), bool).at[:, 0].set(False),
    )

    (loss, core_prob, t, q_enc), (z_qks, core) = dkt_core_forward(Pk, data, num_q)
    jax.block_until_ready(loss)
    jax.block_until_ready(z_qks)
    jax.block_until_ready(core)

    assert np.isfinite(float(loss))
    assert core_prob.shape == t.shape == q_enc.shape
    print("KERNEL_OK")
</pallas_src>

<mosaic_0001>
module attributes {stable_mosaic.version = 11 : i64} {
  func.func @gates_proj_kernel(%arg0: i32, %arg1: memref<16x64xbf16, #tpu.memory_space<vmem>>, %arg2: memref<16x1xf32, #tpu.memory_space<vmem>>, %arg3: memref<128x128xbf16, #tpu.memory_space<vmem>>, %arg4: memref<1x128xf32, #tpu.memory_space<vmem>>, %arg5: memref<16x128xf32, #tpu.memory_space<vmem>>) attributes {dimension_semantics = [#tpu.dimension_semantics<parallel>], iteration_bounds = array<i64: 1>, scalar_prefetch = 0 : i64, scratch_operands = 0 : i64, tpu.core_type = #tpu.core_type<tc>, window_params = [{transform_indices = @transform_0, window_bounds = array<i64: 16, 64>}, {transform_indices = @transform_1, window_bounds = array<i64: 16, 1>}, {pipeline_mode = #tpu.pipeline_mode<synchronous>, transform_indices = @transform_2, window_bounds = array<i64: 128, 128>}, {pipeline_mode = #tpu.pipeline_mode<synchronous>, transform_indices = @transform_3, window_bounds = array<i64: 1, 128>}, {transform_indices = @transform_4, window_bounds = array<i64: 16, 128>}]} {
    %c0 = arith.constant 0 : index
    %c0_0 = arith.constant 0 : index
    %0 = vector.load %arg1[%c0, %c0_0] : memref<16x64xbf16, #tpu.memory_space<vmem>>, vector<16x64xbf16>
    %c0_1 = arith.constant 0 : index
    %c0_2 = arith.constant 0 : index
    %1 = vector.load %arg2[%c0_1, %c0_2] : memref<16x1xf32, #tpu.memory_space<vmem>>, vector<16x1xf32>
    %2 = arith.truncf %1 : vector<16x1xf32> to vector<16x1xbf16>
    %3 = vector.broadcast %2 : vector<16x1xbf16> to vector<16x64xbf16>
    %4 = arith.mulf %0, %3 : vector<16x64xbf16>
    %5 = arith.subf %0, %4 : vector<16x64xbf16>
    %6 = tpu.concatenate %4, %5 in 1 : vector<16x64xbf16>, vector<16x64xbf16> -> vector<16x128xbf16>
    %c0_3 = arith.constant 0 : index
    %c0_4 = arith.constant 0 : index
    %7 = vector.load %arg3[%c0_3, %c0_4] : memref<128x128xbf16, #tpu.memory_space<vmem>>, vector<128x128xbf16>
    %cst = arith.constant dense<0.000000e+00> : vector<16x128xf32>
    %8 = tpu.matmul %6, %7, %cst {dimension_numbers = #tpu.dot_dimension_numbers<[1], [0], [0], [1], [0, 0, 1, 1], [], []>} : vector<16x128xbf16>, vector<128x128xbf16>, vector<16x128xf32> -> vector<16x128xf32>
    %c0_5 = arith.constant 0 : index
    %c0_6 = arith.constant 0 : index
    %9 = vector.load %arg4[%c0_5, %c0_6] : memref<1x128xf32, #tpu.memory_space<vmem>>, vector<1x128xf32>
    %10 = vector.broadcast %9 : vector<1x128xf32> to vector<16x128xf32>
    %11 = arith.addf %8, %10 : vector<16x128xf32>
    %c0_7 = arith.constant 0 : index
    %c0_8 = arith.constant 0 : index
    %12 = vector.load %arg5[%c0_7, %c0_8] : memref<16x128xf32, #tpu.memory_space<vmem>>, vector<16x128xf32>
    tpu.vector_store %arg5[%c0_7, %c0_8], %11 {strides = array<i32>} : memref<16x128xf32, #tpu.memory_space<vmem>>, vector<16x128xf32>,
    return
  }
  func.func @transform_0(%arg0: i32) -> (i32, i32) {
    %c0_i32 = arith.constant 0 : i32
    %c0_i32_0 = arith.constant 0 : i32
    return %arg0, %c0_i32 : i32, i32
  }
  func.func @transform_1(%arg0: i32) -> (i32, i32) {
    %c0_i32 = arith.constant 0 : i32
    %c0_i32_0 = arith.constant 0 : i32
    return %arg0, %c0_i32 : i32, i32
  }
  func.func @transform_2(%arg0: i32) -> (i32, i32) {
    %c0_i32 = arith.constant 0 : i32
    %c0_i32_0 = arith.constant 0 : i32
    %c0_i32_1 = arith.constant 0 : i32
    return %c0_i32, %c0_i32_0 : i32, i32
  }
  func.func @transform_3(%arg0: i32) -> (i32, i32) {
    %c0_i32 = arith.constant 0 : i32
    %c0_i32_0 = arith.constant 0 : i32
    %c0_i32_1 = arith.constant 0 : i32
    return %c0_i32, %c0_i32_0 : i32, i32
  }
  func.func @transform_4(%arg0: i32) -> (i32, i32) {
    %c0_i32 = arith.constant 0 : i32
    %c0_i32_0 = arith.constant 0 : i32
    return %arg0, %c0_i32 : i32, i32
  }
}

module attributes {stable_mosaic.version = 11 : i64} {
  func.func @lstm_kernel(%arg0: i32, %arg1: i32, %arg2: memref<8x2x128xf32, #tpu.memory_space<vmem>>, %arg3: memref<32x128xf32, #tpu.memory_space<vmem>>, %arg4: memref<8x2x32xf32, #tpu.memory_space<vmem>>, %arg5: memref<2x32xf32, #tpu.memory_space<vmem>>, %arg6: memref<2x32xf32, #tpu.memory_space<vmem>>) attributes {dimension_semantics = [#tpu.dimension_semantics<parallel>, #tpu.dimension_semantics<arbitrary>], iteration_bounds = array<i64: 1, 1>, scalar_prefetch = 0 : i64, scratch_operands = 2 : i64, tpu.core_type = #tpu.core_type<tc>, window_params = [{transform_indices = @transform_0, window_bounds = array<i64: 8, 2, 128>}, {pipeline_mode = #tpu.pipeline_mode<synchronous>, transform_indices = @transform_1, window_bounds = array<i64: 32, 128>}, {transform_indices = @transform_2, window_bounds = array<i64: 8, 2, 32>}]} {
    %c0_i32 = arith.constant 0 : i32
    %0 = arith.cmpi eq, %arg1, %c0_i32 : i32
    %1 = arith.extui %0 : i1 to i32
    %c0_i32_0 = arith.constant 0 : i32
    %2 = arith.cmpi ne, %1, %c0_i32_0 : i32
    scf.if %2 {
      %cst_74 = arith.constant 0.000000e+00 : f32
      %280 = vector.broadcast %cst_74 : f32 to vector<2x32xf32>
      %c0_75 = arith.constant 0 : index
      %c0_76 = arith.constant 0 : index
      %281 = vector.load %arg5[%c0_75, %c0_76] : memref<2x32xf32, #tpu.memory_space<vmem>>, vector<2x32xf32>
      tpu.vector_store %arg5[%c0_75, %c0_76], %280 {strides = array<i32>} : memref<2x32xf32, #tpu.memory_space<vmem>>, vector<2x32xf32>,
      %cst_77 = arith.constant 0.000000e+00 : f32
      %282 = vector.broadcast %cst_77 : f32 to vector<2x32xf32>
      %c0_78 = arith.constant 0 : index
      %c0_79 = arith.constant 0 : index
      %283 = vector.load %arg6[%c0_78, %c0_79] : memref<2x32xf32, #tpu.memory_space<vmem>>, vector<2x32xf32>
      tpu.vector_store %arg6[%c0_78, %c0_79], %282 {strides = array<i32>} : memref<2x32xf32, #tpu.memory_space<vmem>>, vector<2x32xf32>,
    } else {
    }
    %c0 = arith.constant 0 : index
    %c0_1 = arith.constant 0 : index
    %3 = vector.load %arg3[%c0, %c0_1] : memref<32x128xf32, #tpu.memory_space<vmem>>, vector<32x128xf32>
    %c0_2 = arith.constant 0 : index
    %c0_3 = arith.constant 0 : index
    %4 = vector.load %arg5[%c0_2, %c0_3] : memref<2x32xf32, #tpu.memory_space<vmem>>, vector<2x32xf32>
    %c0_4 = arith.constant 0 : index
    %c0_5 = arith.constant 0 : index
    %5 = vector.load %arg6[%c0_4, %c0_5] : memref<2x32xf32, #tpu.memory_space<vmem>>, vector<2x32xf32>
    %c0_i32_6 = arith.constant 0 : i32
    %6 = arith.index_cast %c0_i32_6 : i32 to index
    %c0_7 = arith.constant 0 : index
    %c0_8 = arith.constant 0 : index
    %7 = vector.load %arg2[%6, %c0_7, %c0_8] : memref<8x2x128xf32, #tpu.memory_space<vmem>>, vector<1x2x128xf32>
    %8 = vector.shape_cast %7 : vector<1x2x128xf32> to vector<2x128xf32>
    %cst = arith.constant dense<0.000000e+00> : vector<2x128xf32>
    %9 = tpu.matmul %4, %3, %cst {dimension_numbers = #tpu.dot_dimension_numbers<[1], [0], [0], [1], [0, 0, 1, 1], [], []>} : vector<2x32xf32>, vector<32x128xf32>, vector<2x128xf32> -> vector<2x128xf32>
    %10 = arith.addf %8, %9 : vector<2x128xf32>
    %11 = vector.extract_strided_slice %10 {offsets = [0, 0], sizes = [2, 32], strides = [1, 1]} : vector<2x128xf32> to vector<2x32xf32>
    %12 = arith.negf %11 : vector<2x32xf32>
    %13 = math.exp %12 : vector<2x32xf32>
    %cst_9 = arith.constant 1.000000e+00 : f32
    %14 = vector.broadcast %cst_9 : f32 to vector<2x32xf32>
    %15 = arith.addf %14, %13 : vector<2x32xf32>
    %16 = arith.divf %14, %15 : vector<2x32xf32>
    %17 = vector.extract_strided_slice %10 {offsets = [0, 32], sizes = [2, 32], strides = [1, 1]} : vector<2x128xf32> to vector<2x32xf32>
    %18 = arith.negf %17 : vector<2x32xf32>
    %19 = math.exp %18 : vector<2x32xf32>
    %cst_10 = arith.constant 1.000000e+00 : f32
    %20 = vector.broadcast %cst_10 : f32 to vector<2x32xf32>
    %21 = arith.addf %20, %19 : vector<2x32xf32>
    %22 = arith.divf %20, %21 : vector<2x32xf32>
    %23 = vector.extract_strided_slice %10 {offsets = [0, 64], sizes = [2, 32], strides = [1, 1]} : vector<2x128xf32> to vector<2x32xf32>
    %24 = math.tanh %23 : vector<2x32xf32>
    %25 = vector.extract_strided_slice %10 {offsets = [0, 96], sizes = [2, 32], strides = [1, 1]} : vector<2x128xf32> to vector<2x32xf32>
    %26 = arith.negf %25 : vector<2x32xf32>
    %27 = math.exp %26 : vector<2x32xf32>
    %cst_11 = arith.constant 1.000000e+00 : f32
    %28 = vector.broadcast %cst_11 : f32 to vector<2x32xf32>
    %29 = arith.addf %28, %27 : vector<2x32xf32>
    %30 = arith.divf %28, %29 : vector<2x32xf32>
    %31 = arith.mulf %22, %5 : vector<2x32xf32>
    %32 = arith.mulf %16, %24 : vector<2x32xf32>
    %33 = arith.addf %31, %32 : vector<2x32xf32>
    %34 = math.tanh %33 : vector<2x32xf32>
    %35 = arith.mulf %30, %34 : vector<2x32xf32>
    %36 = arith.index_cast %c0_i32_6 : i32 to index
    %c0_12 = arith.constant 0 : index
    %c0_13 = arith.constant 0 : index
    %37 = vector.load %arg4[%36, %c0_12, %c0_13] : memref<8x2x32xf32, #tpu.memory_space<vmem>>, vector<1x2x32xf32>
    %38 = vector.shape_cast %37 : vector<1x2x32xf32> to vector<2x32xf32>
    %39 = vector.shape_cast %35 : vector<2x32xf32> to vector<1x2x32xf32>
    tpu.vector_store %arg4[%36, %c0_12, %c0_13], %39 {strides = array<i32>} : memref<8x2x32xf32, #tpu.memory_space<vmem>>, vector<1x2x32xf32>,
    %c1_i32 = arith.constant 1 : i32
    %40 = arith.index_cast %c1_i32 : i32 to index
    %c0_14 = arith.constant 0 : index
    %c0_15 = arith.constant 0 : index
    %41 = vector.load %arg2[%40, %c0_14, %c0_15] : memref<8x2x128xf32, #tpu.memory_space<vmem>>, vector<1x2x128xf32>
    %42 = vector.shape_cast %41 : vector<1x2x128xf32> to vector<2x128xf32>
    %cst_16 = arith.constant dense<0.000000e+00> : vector<2x128xf32>
    %43 = tpu.matmul %35, %3, %cst_16 {dimension_numbers = #tpu.dot_dimension_numbers<[1], [0], [0], [1], [0, 0, 1, 1], [], []>} : vector<2x32xf32>, vector<32x128xf32>, vector<2x128xf32> -> vector<2x128xf32>
    %44 = arith.addf %42, %43 : vector<2x128xf32>
    %45 = vector.extract_strided_slice %44 {offsets = [0, 0], sizes = [2, 32], strides = [1, 1]} : vector<2x128xf32> to vector<2x32xf32>
    %46 = arith.negf %45 : vector<2x32xf32>
    %47 = math.exp %46 : vector<2x32xf32>
    %cst_17 = arith.constant 1.000000e+00 : f32
    %48 = vector.broadcast %cst_17 : f32 to vector<2x32xf32>
    %49 = arith.addf %48, %47 : vector<2x32xf32>
    %50 = arith.divf %48, %49 : vector<2x32xf32>
    %51 = vector.extract_strided_slice %44 {offsets = [0, 32], sizes = [2, 32], strides = [1, 1]} : vector<2x128xf32> to vector<2x32xf32>
    %52 = arith.negf %51 : vector<2x32xf32>
    %53 = math.exp %52 : vector<2x32xf32>
    %cst_18 = arith.constant 1.000000e+00 : f32
    %54 = vector.broadcast %cst_18 : f32 to vector<2x32xf32>
    %55 = arith.addf %54, %53 : vector<2x32xf32>
    %56 = arith.divf %54, %55 : vector<2x32xf32>
    %57 = vector.extract_strided_slice %44 {offsets = [0, 64], sizes = [2, 32], strides = [1, 1]} : vector<2x128xf32> to vector<2x32xf32>
    %58 = math.tanh %57 : vector<2x32xf32>
    %59 = vector.extract_strided_slice %44 {offsets = [0, 96], sizes = [2, 32], strides = [1, 1]} : vector<2x128xf32> to vector<2x32xf32>
    %60 = arith.negf %59 : vector<2x32xf32>
    %61 = math.exp %60 : vector<2x32xf32>
    %cst_19 = arith.constant 1.000000e+00 : f32
    %62 = vector.broadcast %cst_19 : f32 to vector<2x32xf32>
    %63 = arith.addf %62, %61 : vector<2x32xf32>
    %64 = arith.divf %62, %63 : vector<2x32xf32>
    %65 = arith.mulf %56, %33 : vector<2x32xf32>
    %66 = arith.mulf %50, %58 : vector<2x32xf32>
    %67 = arith.addf %65, %66 : vector<2x32xf32>
    %68 = math.tanh %67 : vector<2x32xf32>
    %69 = arith.mulf %64, %68 : vector<2x32xf32>
    %70 = arith.index_cast %c1_i32 : i32 to index
    %c0_20 = arith.constant 0 : index
    %c0_21 = arith.constant 0 : index
    %71 = vector.load %arg4[%70, %c0_20, %c0_21] : memref<8x2x32xf32, #tpu.memory_space<vmem>>, vector<1x2x32xf32>
    %72 = vector.shape_cast %71 : vector<1x2x32xf32> to vector<2x32xf32>
    %73 = vector.shape_cast %69 : vector<2x32xf32> to vector<1x2x32xf32>
    tpu.vector_store %arg4[%70, %c0_20, %c0_21], %73 {strides = array<i32>} : memref<8x2x32xf32, #tpu.memory_space<vmem>>, vector<1x2x32xf32>,
    %c2_i32 = arith.constant 2 : i32
    %74 = arith.index_cast %c2_i32 : i32 to index
    %c0_22 = arith.constant 0 : index
    %c0_23 = arith.constant 0 : index
    %75 = vector.load %arg2[%74, %c0_22, %c0_23] : memref<8x2x128xf32, #tpu.memory_space<vmem>>, vector<1x2x128xf32>
    %76 = vector.shape_cast %75 : vector<1x2x128xf32> to vector<2x128xf32>
    %cst_24 = arith.constant dense<0.000000e+00> : vector<2x128xf32>
    %77 = tpu.matmul %69, %3, %cst_24 {dimension_numbers = #tpu.dot_dimension_numbers<[1], [0], [0], [1], [0, 0, 1, 1], [], []>} : vector<2x32xf32>, vector<32x128xf32>, vector<2x128xf32> -> vector<2x128xf32>
    %78 = arith.addf %76, %77 : vector<2x128xf32>
    %79 = vector.extract_strided_slice %78 {offsets = [0, 0], sizes = [2, 32], strides = [1, 1]} : vector<2x128xf32> to vector<2x32xf32>
    %80 = arith.negf %79 : vector<2x32xf32>
    %81 = math.exp %80 : vector<2x32xf32>
    %cst_25 = arith.constant 1.000000e+00 : f32
    %82 = vector.broadcast %cst_25 : f32 to vector<2x32xf32>
    %83 = arith.addf %82, %81 : vector<2x32xf32>
    %84 = arith.divf %82, %83 : vector<2x32xf32>
    %85 = vector.extract_strided_slice %78 {offsets = [0, 32], sizes = [2, 32], strides = [1, 1]} : vector<2x128xf32> to vector<2x32xf32>
    %86 = arith.negf %85 : vector<2x32xf32>
    %87 = math.exp %86 : vector<2x32xf32>
    %cst_26 = arith.constant 1.000000e+00 : f32
    %88 = vector.broadcast %cst_26 : f32 to vector<2x32xf32>
    %89 = arith.addf %88, %87 : vector<2x32xf32>
    %90 = arith.divf %88, %89 : vector<2x32xf32>
    %91 = vector.extract_strided_slice %78 {offsets = [0, 64], sizes = [2, 32], strides = [1, 1]} : vector<2x128xf32> to vector<2x32xf32>
    %92 = math.tanh %91 : vector<2x32xf32>
    %93 = vector.extract_strided_slice %78 {offsets = [0, 96], sizes = [2, 32], strides = [1, 1]} : vector<2x128xf32> to vector<2x32xf32>
    %94 = arith.negf %93 : vector<2x32xf32>
    %95 = math.exp %94 : vector<2x32xf32>
    %cst_27 = arith.constant 1.000000e+00 : f32
    %96 = vector.broadcast %cst_27 : f32 to vector<2x32xf32>
    %97 = arith.addf %96, %95 : vector<2x32xf32>
    %98 = arith.divf %96, %97 : vector<2x32xf32>
    %99 = arith.mulf %90, %67 : vector<2x32xf32>
    %100 = arith.mulf %84, %92 : vector<2x32xf32>
    %101 = arith.addf %99, %100 : vector<2x32xf32>
    %102 = math.tanh %101 : vector<2x32xf32>
    %103 = arith.mulf %98, %102 : vector<2x32xf32>
    %104 = arith.index_cast %c2_i32 : i32 to index
    %c0_28 = arith.constant 0 : index
    %c0_29 = arith.constant 0 : index
    %105 = vector.load %arg4[%104, %c0_28, %c0_29] : memref<8x2x32xf32, #tpu.memory_space<vmem>>, vector<1x2x32xf32>
    %106 = vector.shape_cast %105 : vector<1x2x32xf32> to vector<2x32xf32>
    %107 = vector.shape_cast %103 : vector<2x32xf32> to vector<1x2x32xf32>
    tpu.vector_store %arg4[%104, %c0_28, %c0_29], %107 {strides = array<i32>} : memref<8x2x32xf32, #tpu.memory_space<vmem>>, vector<1x2x32xf32>,
    %c3_i32 = arith.constant 3 : i32
    %108 = arith.index_cast %c3_i32 : i32 to index
    %c0_30 = arith.constant 0 : index
    %c0_31 = arith.constant 0 : index
    %109 = vector.load %arg2[%108, %c0_30, %c0_31] : memref<8x2x128xf32, #tpu.memory_space<vmem>>, vector<1x2x128xf32>
    %110 = vector.shape_cast %109 : vector<1x2x128xf32> to vector<2x128xf32>
    %cst_32 = arith.constant dense<0.000000e+00> : vector<2x128xf32>
    %111 = tpu.matmul %103, %3, %cst_32 {dimension_numbers = #tpu.dot_dimension_numbers<[1], [0], [0], [1], [0, 0, 1, 1], [], []>} : vector<2x32xf32>, vector<32x128xf32>, vector<2x128xf32> -> vector<2x128xf32>
    %112 = arith.addf %110, %111 : vector<2x128xf32>
    %113 = vector.extract_strided_slice %112 {offsets = [0, 0], sizes = [2, 32], strides = [1, 1]} : vector<2x128xf32> to vector<2x32xf32>
    %114 = arith.negf %113 : vector<2x32xf32>
    %115 = math.exp %114 : vector<2x32xf32>
    %cst_33 = arith.constant 1.000000e+00 : f32
    %116 = vector.broadcast %cst_33 : f32 to vector<2x32xf32>
    %117 = arith.addf %116, %115 : vector<2x32xf32>
    %118 = arith.divf %116, %117 : vector<2x32xf32>
    %119 = vector.extract_strided_slice %112 {offsets = [0, 32], sizes = [2, 32], strides = [1, 1]} : vector<2x128xf32> to vector<2x32xf32>
    %120 = arith.negf %119 : vector<2x32xf32>
    %121 = math.exp %120 : vector<2x32xf32>
    %cst_34 = arith.constant 1.000000e+00 : f32
    %122 = vector.broadcast %cst_34 : f32 to vector<2x32xf32>
    %123 = arith.addf %122, %121 : vector<2x32xf32>
    %124 = arith.divf %122, %123 : vector<2x32xf32>
    %125 = vector.extract_strided_slice %112 {offsets = [0, 64], sizes = [2, 32], strides = [1, 1]} : vector<2x128xf32> to vector<2x32xf32>
    %126 = math.tanh %125 : vector<2x32xf32>
    %127 = vector.extract_strided_slice %112 {offsets = [0, 96], sizes = [2, 32], strides = [1, 1]} : vector<2x128xf32> to vector<2x32xf32>
    %128 = arith.negf %127 : vector<2x32xf32>
    %129 = math.exp %128 : vector<2x32xf32>
    %cst_35 = arith.constant 1.000000e+00 : f32
    %130 = vector.broadcast %cst_35 : f32 to vector<2x32xf32>
    %131 = arith.addf %130, %129 : vector<2x32xf32>
    %132 = arith.divf %130, %131 : vector<2x32xf32>
    %133 = arith.mulf %124, %101 : vector<2x32xf32>
    %134 = arith.mulf %118, %126 : vector<2x32xf32>
    %135 = arith.addf %133, %134 : vector<2x32xf32>
    %136 = math.tanh %135 : vector<2x32xf32>
    %137 = arith.mulf %132, %136 : vector<2x32xf32>
    %138 = arith.index_cast %c3_i32 : i32 to index
    %c0_36 = arith.constant 0 : index
    %c0_37 = arith.constant 0 : index
    %139 = vector.load %arg4[%138, %c0_36, %c0_37] : memref<8x2x32xf32, #tpu.memory_space<vmem>>, vector<1x2x32xf32>
    %140 = vector.shape_cast %139 : vector<1x2x32xf32> to vector<2x32xf32>
    %141 = vector.shape_cast %137 : vector<2x32xf32> to vector<1x2x32xf32>
    tpu.vector_store %arg4[%138, %c0_36, %c0_37], %141 {strides = array<i32>} : memref<8x2x32xf32, #tpu.memory_space<vmem>>, vector<1x2x32xf32>,
    %c4_i32 = arith.constant 4 : i32
    %142 = arith.index_cast %c4_i32 : i32 to index
    %c0_38 = arith.constant 0 : index
    %c0_39 = arith.constant 0 : index
    %143 = vector.load %arg2[%142, %c0_38, %c0_39] : memref<8x2x128xf32, #tpu.memory_space<vmem>>, vector<1x2x128xf32>
    %144 = vector.shape_cast %143 : vector<1x2x128xf32> to vector<2x128xf32>
    %cst_40 = arith.constant dense<0.000000e+00> : vector<2x128xf32>
    %145 = tpu.matmul %137, %3, %cst_40 {dimension_numbers = #tpu.dot_dimension_numbers<[1], [0], [0], [1], [0, 0, 1, 1], [], []>} : vector<2x32xf32>, vector<32x128xf32>, vector<2x128xf32> -> vector<2x128xf32>
    %146 = arith.addf %144, %145 : vector<2x128xf32>
    %147 = vector.extract_strided_slice %146 {offsets = [0, 0], sizes = [2, 32], strides = [1, 1]} : vector<2x128xf32> to vector<2x32xf32>
    %148 = arith.negf %147 : vector<2x32xf32>
    %149 = math.exp %148 : vector<2x32xf32>
    %cst_41 = arith.constant 1.000000e+00 : f32
    %150 = vector.broadcast %cst_41 : f32 to vector<2x32xf32>
    %151 = arith.addf %150, %149 : vector<2x32xf32>
    %152 = arith.divf %150, %151 : vector<2x32xf32>
    %153 = vector.extract_strided_slice %146 {offsets = [0, 32], sizes = [2, 32], strides = [1, 1]} : vector<2x128xf32> to vector<2x32xf32>
    %154 = arith.negf %153 : vector<2x32xf32>
    %155 = math.exp %154 : vector<2x32xf32>
    %cst_42 = arith.constant 1.000000e+00 : f32
    %156 = vector.broadcast %cst_42 : f32 to vector<2x32xf32>
    %157 = arith.addf %156, %155 : vector<2x32xf32>
    %158 = arith.divf %156, %157 : vector<2x32xf32>
    %159 = vector.extract_strided_slice %146 {offsets = [0, 64], sizes = [2, 32], strides = [1, 1]} : vector<2x128xf32> to vector<2x32xf32>
    %160 = math.tanh %159 : vector<2x32xf32>
    %161 = vector.extract_strided_slice %146 {offsets = [0, 96], sizes = [2, 32], strides = [1, 1]} : vector<2x128xf32> to vector<2x32xf32>
    %162 = arith.negf %161 : vector<2x32xf32>
    %163 = math.exp %162 : vector<2x32xf32>
    %cst_43 = arith.constant 1.000000e+00 : f32
    %164 = vector.broadcast %cst_43 : f32 to vector<2x32xf32>
    %165 = arith.addf %164, %163 : vector<2x32xf32>
    %166 = arith.divf %164, %165 : vector<2x32xf32>
    %167 = arith.mulf %158, %135 : vector<2x32xf32>
    %168 = arith.mulf %152, %160 : vector<2x32xf32>
    %169 = arith.addf %167, %168 : vector<2x32xf32>
    %170 = math.tanh %169 : vector<2x32xf32>
    %171 = arith.mulf %166, %170 : vector<2x32xf32>
    %172 = arith.index_cast %c4_i32 : i32 to index
    %c0_44 = arith.constant 0 : index
    %c0_45 = arith.constant 0 : index
    %173 = vector.load %arg4[%172, %c0_44, %c0_45] : memref<8x2x32xf32, #tpu.memory_space<vmem>>, vector<1x2x32xf32>
    %174 = vector.shape_cast %173 : vector<1x2x32xf32> to vector<2x32xf32>
    %175 = vector.shape_cast %171 : vector<2x32xf32> to vector<1x2x32xf32>
    tpu.vector_store %arg4[%172, %c0_44, %c0_45], %175 {strides = array<i32>} : memref<8x2x32xf32, #tpu.memory_space<vmem>>, vector<1x2x32xf32>,
    %c5_i32 = arith.constant 5 : i32
    %176 = arith.index_cast %c5_i32 : i32 to index
    %c0_46 = arith.constant 0 : index
    %c0_47 = arith.constant 0 : index
    %177 = vector.load %arg2[%176, %c0_46, %c0_47] : memref<8x2x128xf32, #tpu.memory_space<vmem>>, vector<1x2x128xf32>
    %178 = vector.shape_cast %177 : vector<1x2x128xf32> to vector<2x128xf32>
    %cst_48 = arith.constant dense<0.000000e+00> : vector<2x128xf32>
    %179 = tpu.matmul %171, %3, %cst_48 {dimension_numbers = #tpu.dot_dimension_numbers<[1], [0], [0], [1], [0, 0, 1, 1], [], []>} : vector<2x32xf32>, vector<32x128xf32>, vector<2x128xf32> -> vector<2x128xf32>
    %180 = arith.addf %178, %179 : vector<2x128xf32>
    %181 = vector.extract_strided_slice %180 {offsets = [0, 0], sizes = [2, 32], strides = [1, 1]} : vector<2x128xf32> to vector<2x32xf32>
    %182 = arith.negf %181 : vector<2x32xf32>
    %183 = math.exp %182 : vector<2x32xf32>
    %cst_49 = arith.constant 1.000000e+00 : f32
    %184 = vector.broadcast %cst_49 : f32 to vector<2x32xf32>
    %185 = arith.addf %184, %183 : vector<2x32xf32>
    %186 = arith.divf %184, %185 : vector<2x32xf32>
    %187 = vector.extract_strided_slice %180 {offsets = [0, 32], sizes = [2, 32], strides = [1, 1]} : vector<2x128xf32> to vector<2x32xf32>
    %188 = arith.negf %187 : vector<2x32xf32>
    %189 = math.exp %188 : vector<2x32xf32>
    %cst_50 = arith.constant 1.000000e+00 : f32
    %190 = vector.broadcast %cst_50 : f32 to vector<2x32xf32>
    %191 = arith.addf %190, %189 : vector<2x32xf32>
    %192 = arith.divf %190, %191 : vector<2x32xf32>
    %193 = vector.extract_strided_slice %180 {offsets = [0, 64], sizes = [2, 32], strides = [1, 1]} : vector<2x128xf32> to vector<2x32xf32>
    %194 = math.tanh %193 : vector<2x32xf32>
    %195 = vector.extract_strided_slice %180 {offsets = [0, 96], sizes = [2, 32], strides = [1, 1]} : vector<2x128xf32> to vector<2x32xf32>
    %196 = arith.negf %195 : vector<2x32xf32>
    %197 = math.exp %196 : vector<2x32xf32>
    %cst_51 = arith.constant 1.000000e+00 : f32
    %198 = vector.broadcast %cst_51 : f32 to vector<2x32xf32>
    %199 = arith.addf %198, %197 : vector<2x32xf32>
    %200 = arith.divf %198, %199 : vector<2x32xf32>
    %201 = arith.mulf %192, %169 : vector<2x32xf32>
    %202 = arith.mulf %186, %194 : vector<2x32xf32>
    %203 = arith.addf %201, %202 : vector<2x32xf32>
    %204 = math.tanh %203 : vector<2x32xf32>
    %205 = arith.mulf %200, %204 : vector<2x32xf32>
    %206 = arith.index_cast %c5_i32 : i32 to index
    %c0_52 = arith.constant 0 : index
    %c0_53 = arith.constant 0 : index
    %207 = vector.load %arg4[%206, %c0_52, %c0_53] : memref<8x2x32xf32, #tpu.memory_space<vmem>>, vector<1x2x32xf32>
    %208 = vector.shape_cast %207 : vector<1x2x32xf32> to vector<2x32xf32>
    %209 = vector.shape_cast %205 : vector<2x32xf32> to vector<1x2x32xf32>
    tpu.vector_store %arg4[%206, %c0_52, %c0_53], %209 {strides = array<i32>} : memref<8x2x32xf32, #tpu.memory_space<vmem>>, vector<1x2x32xf32>,
    %c6_i32 = arith.constant 6 : i32
    %210 = arith.index_cast %c6_i32 : i32 to index
    %c0_54 = arith.constant 0 : index
    %c0_55 = arith.constant 0 : index
    %211 = vector.load %arg2[%210, %c0_54, %c0_55] : memref<8x2x128xf32, #tpu.memory_space<vmem>>, vector<1x2x128xf32>
    %212 = vector.shape_cast %211 : vector<1x2x128xf32> to vector<2x128xf32>
    %cst_56 = arith.constant dense<0.000000e+00> : vector<2x128xf32>
    %213 = tpu.matmul %205, %3, %cst_56 {dimension_numbers = #tpu.dot_dimension_numbers<[1], [0], [0], [1], [0, 0, 1, 1], [], []>} : vector<2x32xf32>, vector<32x128xf32>, vector<2x128xf32> -> vector<2x128xf32>
    %214 = arith.addf %212, %213 : vector<2x128xf32>
    %215 = vector.extract_strided_slice %214 {offsets = [0, 0], sizes = [2, 32], strides = [1, 1]} : vector<2x128xf32> to vector<2x32xf32>
    %216 = arith.negf %215 : vector<2x32xf32>
    %217 = math.exp %216 : vector<2x32xf32>
    %cst_57 = arith.constant 1.000000e+00 : f32
    %218 = vector.broadcast %cst_57 : f32 to vector<2x32xf32>
    %219 = arith.addf %218, %217 : vector<2x32xf32>
    %220 = arith.divf %218, %219 : vector<2x32xf32>
    %221 = vector.extract_strided_slice %214 {offsets = [0, 32], sizes = [2, 32], strides = [1, 1]} : vector<2x128xf32> to vector<2x32xf32>
    %222 = arith.negf %221 : vector<2x32xf32>
    %223 = math.exp %222 : vector<2x32xf32>
    %cst_58 = arith.constant 1.000000e+00 : f32
    %224 = vector.broadcast %cst_58 : f32 to vector<2x32xf32>
    %225 = arith.addf %224, %223 : vector<2x32xf32>
    %226 = arith.divf %224, %225 : vector<2x32xf32>
    %227 = vector.extract_strided_slice %214 {offsets = [0, 64], sizes = [2, 32], strides = [1, 1]} : vector<2x128xf32> to vector<2x32xf32>
    %228 = math.tanh %227 : vector<2x32xf32>
    %229 = vector.extract_strided_slice %214 {offsets = [0, 96], sizes = [2, 32], strides = [1, 1]} : vector<2x128xf32> to vector<2x32xf32>
    %230 = arith.negf %229 : vector<2x32xf32>
    %231 = math.exp %230 : vector<2x32xf32>
    %cst_59 = arith.constant 1.000000e+00 : f32
    %232 = vector.broadcast %cst_59 : f32 to vector<2x32xf32>
    %233 = arith.addf %232, %231 : vector<2x32xf32>
    %234 = arith.divf %232, %233 : vector<2x32xf32>
    %235 = arith.mulf %226, %203 : vector<2x32xf32>
    %236 = arith.mulf %220, %228 : vector<2x32xf32>
    %237 = arith.addf %235, %236 : vector<2x32xf32>
    %238 = math.tanh %237 : vector<2x32xf32>
    %239 = arith.mulf %234, %238 : vector<2x32xf32>
    %240 = arith.index_cast %c6_i32 : i32 to index
    %c0_60 = arith.constant 0 : index
    %c0_61 = arith.constant 0 : index
    %241 = vector.load %arg4[%240, %c0_60, %c0_61] : memref<8x2x32xf32, #tpu.memory_space<vmem>>, vector<1x2x32xf32>
    %242 = vector.shape_cast %241 : vector<1x2x32xf32> to vector<2x32xf32>
    %243 = vector.shape_cast %239 : vector<2x32xf32> to vector<1x2x32xf32>
    tpu.vector_store %arg4[%240, %c0_60, %c0_61], %243 {strides = array<i32>} : memref<8x2x32xf32, #tpu.memory_space<vmem>>, vector<1x2x32xf32>,
    %c7_i32 = arith.constant 7 : i32
    %244 = arith.index_cast %c7_i32 : i32 to index
    %c0_62 = arith.constant 0 : index
    %c0_63 = arith.constant 0 : index
    %245 = vector.load %arg2[%244, %c0_62, %c0_63] : memref<8x2x128xf32, #tpu.memory_space<vmem>>, vector<1x2x128xf32>
    %246 = vector.shape_cast %245 : vector<1x2x128xf32> to vector<2x128xf32>
    %cst_64 = arith.constant dense<0.000000e+00> : vector<2x128xf32>
    %247 = tpu.matmul %239, %3, %cst_64 {dimension_numbers = #tpu.dot_dimension_numbers<[1], [0], [0], [1], [0, 0, 1, 1], [], []>} : vector<2x32xf32>, vector<32x128xf32>, vector<2x128xf32> -> vector<2x128xf32>
    %248 = arith.addf %246, %247 : vector<2x128xf32>
    %249 = vector.extract_strided_slice %248 {offsets = [0, 0], sizes = [2, 32], strides = [1, 1]} : vector<2x128xf32> to vector<2x32xf32>
    %250 = arith.negf %249 : vector<2x32xf32>
    %251 = math.exp %250 : vector<2x32xf32>
    %cst_65 = arith.constant 1.000000e+00 : f32
    %252 = vector.broadcast %cst_65 : f32 to vector<2x32xf32>
    %253 = arith.addf %252, %251 : vector<2x32xf32>
    %254 = arith.divf %252, %253 : vector<2x32xf32>
    %255 = vector.extract_strided_slice %248 {offsets = [0, 32], sizes = [2, 32], strides = [1, 1]} : vector<2x128xf32> to vector<2x32xf32>
    %256 = arith.negf %255 : vector<2x32xf32>
    %257 = math.exp %256 : vector<2x32xf32>
    %cst_66 = arith.constant 1.000000e+00 : f32
    %258 = vector.broadcast %cst_66 : f32 to vector<2x32xf32>
    %259 = arith.addf %258, %257 : vector<2x32xf32>
    %260 = arith.divf %258, %259 : vector<2x32xf32>
    %261 = vector.extract_strided_slice %248 {offsets = [0, 64], sizes = [2, 32], strides = [1, 1]} : vector<2x128xf32> to vector<2x32xf32>
    %262 = math.tanh %261 : vector<2x32xf32>
    %263 = vector.extract_strided_slice %248 {offsets = [0, 96], sizes = [2, 32], strides = [1, 1]} : vector<2x128xf32> to vector<2x32xf32>
    %264 = arith.negf %263 : vector<2x32xf32>
    %265 = math.exp %264 : vector<2x32xf32>
    %cst_67 = arith.constant 1.000000e+00 : f32
    %266 = vector.broadcast %cst_67 : f32 to vector<2x32xf32>
    %267 = arith.addf %266, %265 : vector<2x32xf32>
    %268 = arith.divf %266, %267 : vector<2x32xf32>
    %269 = arith.mulf %260, %237 : vector<2x32xf32>
    %270 = arith.mulf %254, %262 : vector<2x32xf32>
    %271 = arith.addf %269, %270 : vector<2x32xf32>
    %272 = math.tanh %271 : vector<2x32xf32>
    %273 = arith.mulf %268, %272 : vector<2x32xf32>
    %274 = arith.index_cast %c7_i32 : i32 to index
    %c0_68 = arith.constant 0 : index
    %c0_69 = arith.constant 0 : index
    %275 = vector.load %arg4[%274, %c0_68, %c0_69] : memref<8x2x32xf32, #tpu.memory_space<vmem>>, vector<1x2x32xf32>
    %276 = vector.shape_cast %275 : vector<1x2x32xf32> to vector<2x32xf32>
    %277 = vector.shape_cast %273 : vector<2x32xf32> to vector<1x2x32xf32>
    tpu.vector_store %arg4[%274, %c0_68, %c0_69], %277 {strides = array<i32>} : memref<8x2x32xf32, #tpu.memory_space<vmem>>, vector<1x2x32xf32>,
    %c8_i32 = arith.constant 8 : i32
    %c0_70 = arith.constant 0 : index
    %c0_71 = arith.constant 0 : index
    %278 = vector.load %arg5[%c0_70, %c0_71] : memref<2x32xf32, #tpu.memory_space<vmem>>, vector<2x32xf32>
    tpu.vector_store %arg5[%c0_70, %c0_71], %273 {strides = array<i32>} : memref<2x32xf32, #tpu.memory_space<vmem>>, vector<2x32xf32>,
    %c0_72 = arith.constant 0 : index
    %c0_73 = arith.constant 0 : index
    %279 = vector.load %arg6[%c0_72, %c0_73] : memref<2x32xf32, #tpu.memory_space<vmem>>, vector<2x32xf32>
    tpu.vector_store %arg6[%c0_72, %c0_73], %271 {strides = array<i32>} : memref<2x32xf32, #tpu.memory_space<vmem>>, vector<2x32xf32>,
    return
  }
  func.func @transform_0(%arg0: i32, %arg1: i32) -> (i32, i32, i32) {
    %c0_i32 = arith.constant 0 : i32
    %c0_i32_0 = arith.constant 0 : i32
    return %arg1, %arg0, %c0_i32 : i32, i32, i32
  }
  func.func @transform_1(%arg0: i32, %arg1: i32) -> (i32, i32) {
    %c0_i32 = arith.constant 0 : i32
    %c0_i32_0 = arith.constant 0 : i32
    %c0_i32_1 = arith.constant 0 : i32
    return %c0_i32, %c0_i32_0 : i32, i32
  }
  func.func @transform_2(%arg0: i32, %arg1: i32) -> (i32, i32, i32) {
    %c0_i32 = arith.constant 0 : i32
    %c0_i32_0 = arith.constant 0 : i32
    return %arg1, %arg0, %c0_i32 : i32, i32, i32
  }
}

module attributes {stable_mosaic.version = 11 : i64} {
  func.func @heads_kernel(%arg0: i32, %arg1: memref<16x32xbf16, #tpu.memory_space<vmem>>, %arg2: memref<16x64xbf16, #tpu.memory_space<vmem>>, %arg3: memref<32x128xbf16, #tpu.memory_space<vmem>>, %arg4: memref<64x128xbf16, #tpu.memory_space<vmem>>, %arg5: memref<1x128xf32, #tpu.memory_space<vmem>>, %arg6: memref<128x128xbf16, #tpu.memory_space<vmem>>, %arg7: memref<1x128xf32, #tpu.memory_space<vmem>>, %arg8: memref<128x2xbf16, #tpu.memory_space<vmem>>, %arg9: memref<1x2xf32, #tpu.memory_space<vmem>>, %arg10: memref<1x2xf32, #tpu.memory_space<vmem>>, %arg11: memref<16x8xf32, #tpu.memory_space<vmem>>) attributes {dimension_semantics = [#tpu.dimension_semantics<parallel>], iteration_bounds = array<i64: 1>, scalar_prefetch = 0 : i64, scratch_operands = 0 : i64, tpu.core_type = #tpu.core_type<tc>, window_params = [{transform_indices = @transform_0, window_bounds = array<i64: 16, 32>}, {transform_indices = @transform_1, window_bounds = array<i64: 16, 64>}, {pipeline_mode = #tpu.pipeline_mode<synchronous>, transform_indices = @transform_2, window_bounds = array<i64: 32, 128>}, {pipeline_mode = #tpu.pipeline_mode<synchronous>, transform_indices = @transform_3, window_bounds = array<i64: 64, 128>}, {pipeline_mode = #tpu.pipeline_mode<synchronous>, transform_indices = @transform_4, window_bounds = array<i64: 1, 128>}, {pipeline_mode = #tpu.pipeline_mode<synchronous>, transform_indices = @transform_5, window_bounds = array<i64: 128, 128>}, {pipeline_mode = #tpu.pipeline_mode<synchronous>, transform_indices = @transform_6, window_bounds = array<i64: 1, 128>}, {pipeline_mode = #tpu.pipeline_mode<synchronous>, transform_indices = @transform_7, window_bounds = array<i64: 128, 2>}, {pipeline_mode = #tpu.pipeline_mode<synchronous>, transform_indices = @transform_8, window_bounds = array<i64: 1, 2>}, {pipeline_mode = #tpu.pipeline_mode<synchronous>, transform_indices = @transform_9, window_bounds = array<i64: 1, 2>}, {transform_indices = @transform_10, window_bounds = array<i64: 16, 8>}]} {
    %c0 = arith.constant 0 : index
    %c0_0 = arith.constant 0 : index
    %0 = vector.load %arg1[%c0, %c0_0] : memref<16x32xbf16, #tpu.memory_space<vmem>>, vector<16x32xbf16>
    %c0_1 = arith.constant 0 : index
    %c0_2 = arith.constant 0 : index
    %1 = vector.load %arg2[%c0_1, %c0_2] : memref<16x64xbf16, #tpu.memory_space<vmem>>, vector<16x64xbf16>
    %c0_3 = arith.constant 0 : index
    %c0_4 = arith.constant 0 : index
    %2 = vector.load %arg3[%c0_3, %c0_4] : memref<32x128xbf16, #tpu.memory_space<vmem>>, vector<32x128xbf16>
    %cst = arith.constant dense<0.000000e+00> : vector<16x128xf32>
    %3 = tpu.matmul %0, %2, %cst {dimension_numbers = #tpu.dot_dimension_numbers<[1], [0], [0], [1], [0, 0, 1, 1], [], []>} : vector<16x32xbf16>, vector<32x128xbf16>, vector<16x128xf32> -> vector<16x128xf32>
    %c0_5 = arith.constant 0 : index
    %c0_6 = arith.constant 0 : index
    %4 = vector.load %arg4[%c0_5, %c0_6] : memref<64x128xbf16, #tpu.memory_space<vmem>>, vector<64x128xbf16>
    %cst_7 = arith.constant dense<0.000000e+00> : vector<16x128xf32>
    %5 = tpu.matmul %1, %4, %cst_7 {dimension_numbers = #tpu.dot_dimension_numbers<[1], [0], [0], [1], [0, 0, 1, 1], [], []>} : vector<16x64xbf16>, vector<64x128xbf16>, vector<16x128xf32> -> vector<16x128xf32>
    %6 = arith.addf %3, %5 : vector<16x128xf32>
    %c0_8 = arith.constant 0 : index
    %c0_9 = arith.constant 0 : index
    %7 = vector.load %arg5[%c0_8, %c0_9] : memref<1x128xf32, #tpu.memory_space<vmem>>, vector<1x128xf32>
    %8 = vector.broadcast %7 : vector<1x128xf32> to vector<16x128xf32>
    %9 = arith.addf %6, %8 : vector<16x128xf32>
    %10 = vector.extract_strided_slice %9 {offsets = [0, 96], sizes = [16, 2], strides = [1, 1]} : vector<16x128xf32> to vector<16x2xf32>
    %cst_10 = arith.constant 0.000000e+00 : f32
    %11 = vector.broadcast %cst_10 : f32 to vector<16x128xf32>
    %12 = arith.maximumf %9, %11 : vector<16x128xf32>
    %13 = arith.truncf %12 : vector<16x128xf32> to vector<16x128xbf16>
    %c0_11 = arith.constant 0 : index
    %c0_12 = arith.constant 0 : index
    %14 = vector.load %arg6[%c0_11, %c0_12] : memref<128x128xbf16, #tpu.memory_space<vmem>>, vector<128x128xbf16>
    %cst_13 = arith.constant dense<0.000000e+00> : vector<16x128xf32>
    %15 = tpu.matmul %13, %14, %cst_13 {dimension_numbers = #tpu.dot_dimension_numbers<[1], [0], [0], [1], [0, 0, 1, 1], [], []>} : vector<16x128xbf16>, vector<128x128xbf16>, vector<16x128xf32> -> vector<16x128xf32>
    %c0_14 = arith.constant 0 : index
    %c0_15 = arith.constant 0 : index
    %16 = vector.load %arg7[%c0_14, %c0_15] : memref<1x128xf32, #tpu.memory_space<vmem>>, vector<1x128xf32>
    %17 = vector.broadcast %16 : vector<1x128xf32> to vector<16x128xf32>
    %18 = arith.addf %15, %17 : vector<16x128xf32>
    %19 = vector.extract_strided_slice %18 {offsets = [0, 64], sizes = [16, 2], strides = [1, 1]} : vector<16x128xf32> to vector<16x2xf32>
    %cst_16 = arith.constant 0.000000e+00 : f32
    %20 = vector.broadcast %cst_16 : f32 to vector<16x128xf32>
    %21 = arith.maximumf %18, %20 : vector<16x128xf32>
    %22 = arith.truncf %21 : vector<16x128xf32> to vector<16x128xbf16>
    %c0_17 = arith.constant 0 : index
    %c0_18 = arith.constant 0 : index
    %23 = vector.load %arg8[%c0_17, %c0_18] : memref<128x2xbf16, #tpu.memory_space<vmem>>, vector<128x2xbf16>
    %cst_19 = arith.constant dense<0.000000e+00> : vector<16x2xf32>
    %24 = tpu.matmul %22, %23, %cst_19 {dimension_numbers = #tpu.dot_dimension_numbers<[1], [0], [0], [1], [0, 0, 1, 1], [], []>} : vector<16x128xbf16>, vector<128x2xbf16>, vector<16x2xf32> -> vector<16x2xf32>
    %c0_20 = arith.constant 0 : index
    %c0_21 = arith.constant 0 : index
    %25 = vector.load %arg9[%c0_20, %c0_21] : memref<1x2xf32, #tpu.memory_space<vmem>>, vector<1x2xf32>
    %26 = vector.broadcast %25 : vector<1x2xf32> to vector<16x2xf32>
    %27 = arith.addf %24, %26 : vector<16x2xf32>
    %28 = arith.addf %19, %27 : vector<16x2xf32>
    %29 = arith.addf %28, %10 : vector<16x2xf32>
    %30 = arith.negf %29 : vector<16x2xf32>
    %31 = math.exp %30 : vector<16x2xf32>
    %cst_22 = arith.constant 1.000000e+00 : f32
    %32 = vector.broadcast %cst_22 : f32 to vector<16x2xf32>
    %33 = arith.addf %32, %31 : vector<16x2xf32>
    %34 = arith.divf %32, %33 : vector<16x2xf32>
    %cst_23 = arith.constant 9.99999996E-13 : f32
    %35 = vector.broadcast %cst_23 : f32 to vector<16x2xf32>
    %36 = arith.addf %34, %35 : vector<16x2xf32>
    %37 = math.log %36 : vector<16x2xf32>
    %c0_24 = arith.constant 0 : index
    %c0_25 = arith.constant 0 : index
    %38 = vector.load %arg10[%c0_24, %c0_25] : memref<1x2xf32, #tpu.memory_space<vmem>>, vector<1x2xf32>
    %39 = vector.broadcast %38 : vector<1x2xf32> to vector<16x2xf32>
    %40 = arith.addf %27, %39 : vector<16x2xf32>
    %41 = arith.negf %40 : vector<16x2xf32>
    %42 = math.exp %41 : vector<16x2xf32>
    %cst_26 = arith.constant 1.000000e+00 : f32
    %43 = vector.broadcast %cst_26 : f32 to vector<16x2xf32>
    %44 = arith.addf %43, %42 : vector<16x2xf32>
    %45 = arith.divf %43, %44 : vector<16x2xf32>
    %cst_27 = arith.constant 9.99999996E-13 : f32
    %46 = vector.broadcast %cst_27 : f32 to vector<16x2xf32>
    %47 = arith.addf %45, %46 : vector<16x2xf32>
    %48 = math.log %47 : vector<16x2xf32>
    %49 = arith.subf %37, %48 : vector<16x2xf32>
    %50 = tpu.concatenate %27, %37, %48, %49 in 1 : vector<16x2xf32>, vector<16x2xf32>, vector<16x2xf32>, vector<16x2xf32> -> vector<16x8xf32>
    %c0_28 = arith.constant 0 : index
    %c0_29 = arith.constant 0 : index
    %51 = vector.load %arg11[%c0_28, %c0_29] : memref<16x8xf32, #tpu.memory_space<vmem>>, vector<16x8xf32>
    tpu.vector_store %arg11[%c0_28, %c0_29], %50 {strides = array<i32>} : memref<16x8xf32, #tpu.memory_space<vmem>>, vector<16x8xf32>,
    return
  }
  func.func @transform_0(%arg0: i32) -> (i32, i32) {
    %c0_i32 = arith.constant 0 : i32
    %c0_i32_0 = arith.constant 0 : i32
    return %arg0, %c0_i32 : i32, i32
  }
  func.func @transform_1(%arg0: i32) -> (i32, i32) {
    %c0_i32 = arith.constant 0 : i32
    %c0_i32_0 = arith.constant 0 : i32
    return %arg0, %c0_i32 : i32, i32
  }
  func.func @transform_2(%arg0: i32) -> (i32, i32) {
    %c0_i32 = arith.constant 0 : i32
    %c0_i32_0 = arith.constant 0 : i32
    %c0_i32_1 = arith.constant 0 : i32
    return %c0_i32, %c0_i32_0 : i32, i32
  }
  func.func @transform_3(%arg0: i32) -> (i32, i32) {
    %c0_i32 = arith.constant 0 : i32
    %c0_i32_0 = arith.constant 0 : i32
    %c0_i32_1 = arith.constant 0 : i32
    return %c0_i32, %c0_i32_0 : i32, i32
  }
  func.func @transform_4(%arg0: i32) -> (i32, i32) {
    %c0_i32 = arith.constant 0 : i32
    %c0_i32_0 = arith.constant 0 : i32
    %c0_i32_1 = arith.constant 0 : i32
    return %c0_i32, %c0_i32_0 : i32, i32
  }
  func.func @transform_5(%arg0: i32) -> (i32, i32) {
    %c0_i32 = arith.constant 0 : i32
    %c0_i32_0 = arith.constant 0 : i32
    %c0_i32_1 = arith.constant 0 : i32
    return %c0_i32, %c0_i32_0 : i32, i32
  }
  func.func @transform_6(%arg0: i32) -> (i32, i32) {
    %c0_i32 = arith.constant 0 : i32
    %c0_i32_0 = arith.constant 0 : i32
    %c0_i32_1 = arith.constant 0 : i32
    return %c0_i32, %c0_i32_0 : i32, i32
  }
  func.func @transform_7(%arg0: i32) -> (i32, i32) {
    %c0_i32 = arith.constant 0 : i32
    %c0_i32_0 = arith.constant 0 : i32
    %c0_i32_1 = arith.constant 0 : i32
    return %c0_i32, %c0_i32_0 : i32, i32
  }
  func.func @transform_8(%arg0: i32) -> (i32, i32) {
    %c0_i32 = arith.constant 0 : i32
    %c0_i32_0 = arith.constant 0 : i32
    %c0_i32_1 = arith.constant 0 : i32
    return %c0_i32, %c0_i32_0 : i32, i32
  }
  func.func @transform_9(%arg0: i32) -> (i32, i32) {
    %c0_i32 = arith.constant 0 : i32
    %c0_i32_0 = arith.constant 0 : i32
    %c0_i32_1 = arith.constant 0 : i32
    return %c0_i32, %c0_i32_0 : i32, i32
  }
  func.func @transform_10(%arg0: i32) -> (i32, i32) {
    %c0_i32 = arith.constant 0 : i32
    %c0_i32_0 = arith.constant 0 : i32
    return %arg0, %c0_i32 : i32, i32
  }
}

</mosaic_0001>

<bundles_post_ra>
// kernel: dkt_core_device.3
= control target key start
LH: loop header
LB: loop body
LE: loop exit
PB: predicated region body
PF: predicated region fallthrough
CT: control target
= control target key end

     0   :  { %v209_v0 = vmov 0   ;;  %v210_v5 = vmov 839922192   ;;  %s211_s9 = smov 64   ;;  %vm67_vm0 = vcmask 523264   ;;  %s279_s1 = inlined_call_operand.vmem [shape: f32[16,1], index: 1, kind: input, shape index: {}]   ;;  %s280_s2 = inlined_call_operand.vmem [shape: bf16[128,128], index: 2, kind: input, shape index: {}]   ;;  %s281_s0 = inlined_call_operand.vmem [shape: bf16[16,64], index: 0, kind: input, shape index: {}]   ;;  %s282_s3 = inlined_call_operand.vmem [shape: f32[1,128], index: 3, kind: input, shape index: {}]   ;;  %s283_s4 = inlined_call_operand.vmem [shape: f32[16,128], index: 4, kind: output, shape index: {}]  }
   0x1   :  { %207 = vset.pattern.permute.xlu0 %v209_v0  ;;  %v19_v1 = vld [vmem:[%s279_s1] sm:$0xff]  ;;  %v20_v3 = vld [vmem:[%s279_s1 + $0x8] sm:$0xff]  ;;  %v29_v6 = vunpack.c.l.s4 %v210_v5  ;;  %v199_v7 = vld [vmem:[%s280_s2 + $0x38] sm:$0xff] }
   0x2   :  { %v21_v2 = vpack.c.bf16 %v19_v1, %v19_v1  ;;  %v22_v4 = vpack.c.bf16 %v20_v3, %v20_v3  ;;  %140 = vmatpush.bf16.msra.mxu0 %v199_v7  ;;  %v198_v9 = vld [vmem:[%s280_s2 + $0x30] sm:$0xff]  ;;  %v201_v10 = vld [vmem:[%s281_s0] sm:$0xff]   ;;  %v197_v14 = vld [vmem:[%s280_s2 + $0x28] sm:$0xff] }
   0x3   :  { %v30_v8 = vunpack.c.0.s8 %v29_v6  ;;  %v202_v12 = vunpack.c.l.bf16 %v201_v10  ;;  %v196_v17 = vld [vmem:[%s280_s2 + $0x20] sm:$0xff]  ;;  %v203_v20 = vunpack.c.h.bf16 %v201_v10  ;;  %v195_v22 = vld [vmem:[%s280_s2 + $0x18] sm:$0xff]  ;;  %v194_v26 = vld [vmem:[%s280_s2 + $0x10] sm:$0xff] }
   0x4   :  { %25 = vperm.xlu0 %207, %v21_v2   ;;  %v193_v32 = vld [vmem:[%s280_s2 + $0x8] sm:$0xff]  ;;  %v192_v37 = vld [vmem:[%s280_s2] sm:$0xff] }
   0x5   :  { %v208_v43 = vld [vmem:[%s282_s3] ss:$0 sm:$0xff] }
   0x6   :  { %141 = vmatpush.bf16.msra.mxu0 %v198_v9 }
   0xa   :  { %142 = vmatpush.bf16.msra.mxu0 %v197_v14 }
   0xc   :  { %34 = vperm.xlu0 %207, %v22_v4  }
   0xe   :  { %143 = vmatpush.bf16.msra.mxu0 %v196_v17 }
  0x12   :  { %144 = vmatpush.bf16.msra.mxu0 %v195_v22 }
  0x16   :  { %145 = vmatpush.bf16.msra.mxu0 %v194_v26 }
  0x1a   :  { %146 = vmatpush.bf16.msra.mxu0 %v193_v32 }
  0x1e   :  { %147 = vmatpush.bf16.msra.mxu0 %v192_v37 }
  0x76   :  { %v26_v11 = vpop.permute.xlu0 %25 }
  0x77   :  { %v31_v13 = vperm.slane %v26_v11, %v30_v8 }
  0x79   :  { %v43_v15 = vunpack.c.l.bf16 %v31_v13 }
  0x7b   :  { %v45_v16 = vmul.f32 %v202_v12, %v43_v15 }
  0x7d   :  { %v47_v18 = vpack.c.bf16 %v45_v16, %v45_v16 }
  0x7e   :  { %v35_v19 = vpop.permute.xlu0 %34 }
  0x7f   :  { %v40_v21 = vperm.slane %v35_v19, %v30_v8  ;;  %v49_v23 = vunpack.c.l.bf16 %v47_v18  ;;  %v57_v29 = vunpack.c.l.b16 %v47_v18 }
  0x81   :  { %v44_v24 = vunpack.c.l.bf16 %v40_v21  ;;  %v51_v28 = vsub.f32 %v202_v12, %v49_v23 }
  0x83   :  { %v46_v25 = vmul.f32 %v203_v20, %v44_v24  ;;  %v53_v34 = vpack.c.bf16 %v51_v28, %v51_v28 }
  0x85   :  { %v48_v27 = vpack.c.bf16 %v46_v25, %v46_v25  ;;  %v62_v38 = vunpack.c.l.b16 %v53_v34 }
  0x87   :  { %v50_v30 = vunpack.c.l.bf16 %v48_v27  ;;  %v58_v31 = vunpack.c.l.b16 %v48_v27 }
  0x89   :  { %v52_v33 = vsub.f32 %v203_v20, %v50_v30  ;;  %v59_v35 = vpack.c.b16 %v58_v31, %v57_v29 }
  0x8b   :  { %v54_v36 = vpack.c.bf16 %v52_v33, %v52_v33 }
  0x8d   :  { %v63_v39 = vunpack.c.l.b16 %v54_v36 }
  0x8f   :  { %v64_v40 = vpack.c.b16 %v63_v39, %v62_v38 }
  0x91   :  { %65 = vrot.lane.b32.xlu1 %v64_v40, %s211_s9 }
 0x103   :  { %v66_v41 = vpop.permute.xlu1 %65 }
 0x104   :  { %v70_v42 = vsel %vm67_vm0, %v59_v35, %v66_v41 }
 0x105   :  { %148 = vmatmul.bf16.vlgmr.msra.gmra.mxu0 %v70_v42 }
 0x182   :  { %v149_v44 = vpop.f32.mrf.mxu0 }
 0x183   :  { %v150_v45 = vadd.f32 %v208_v43, %v149_v44 }
 0x185   :  { %154 = vst [vmem:[%s283_s4] sm:$0xff] %v150_v45 }
 0x18a   :  { %v151_v46 = vpop.f32.mrf.mxu0 }
 0x18b   :  { %v152_v47 = vadd.f32 %v208_v43, %v151_v46 }
 0x18d   :  { %155 = vst [vmem:[%s283_s4 + $0x8] sm:$0xff] %v152_v47 }

// kernel: dkt_core_device.5
= control target key start
LH: loop header
LB: loop body
LE: loop exit
PB: predicated region body
PF: predicated region fallthrough
CT: control target
= control target key end

     0   :  { %vm116_vm0 = vcmask 261120   ;;  %vm81_vm1 = vcmask 523264   ;;  %s631_s23 = smov 96   ;;  %s635_s19 = smov 70   ;;  %s809_s3 = inlined_call_operand.vmem [shape: bf16[64,128], index: 3, kind: input, shape index: {}]   ;;  %s810_s2 = inlined_call_operand.vmem [shape: bf16[32,128], index: 2, kind: input, shape index: {}]   ;;  %s811_s5 = inlined_call_operand.vmem [shape: bf16[128,128], index: 5, kind: input, shape index: {}]   ;;  %s812_s0 = inlined_call_operand.vmem [shape: bf16[16,32], index: 0, kind: input, shape index: {}]   ;;  %s813_s1 = inlined_call_operand.vmem [shape: bf16[16,64], index: 1, kind: input, shape index: {}]   ;;  %s814_s4 = inlined_call_operand.vmem [shape: f32[1,128], index: 4, kind: input, shape index: {}]   ;;  %s815_s6 = inlined_call_operand.vmem [shape: f32[1,128], index: 6, kind: input, shape index: {}]   ;;  %s816_s8 = inlined_call_operand.vmem [shape: f32[1,2], index: 8, kind: input, shape index: {}]   ;;  %s817_s9 = inlined_call_operand.vmem [shape: f32[1,2], index: 9, kind: input, shape index: {}]   ;;  %s818_s7 = inlined_call_operand.vmem [shape: bf16[128,2], index: 7, kind: input, shape index: {}]   ;;  %s819_s10 = inlined_call_operand.vmem [shape: f32[16,8], index: 10, kind: output, shape index: {}]  }
   0x1   :  { %v581_v0 = vld [vmem:[%s809_s3 + $0x18] sm:$0xff]  ;;  %v577_v1 = vld [vmem:[%s810_s2 + $0x8] sm:$0xff]  ;;  %v580_v2 = vld [vmem:[%s809_s3 + $0x10] sm:$0xff] }
   0x2   :  { %89 = vmatpush.bf16.msra.mxu0 %v581_v0  ;;  %126 = vmatpush.bf16.msra.mxu1 %v577_v1  ;;  %v576_v3 = vld [vmem:[%s810_s2] sm:$0xff]  ;;  %v589_v4 = vld [vmem:[%s811_s5 + $0x38] sm:$0xff]  ;;  %v588_v5 = vld [vmem:[%s811_s5 + $0x30] sm:$0xff] }
   0x3   :  { %211 = vmatpush.bf16.msra.mxu2 %v589_v4  ;;  %v574_v6 = vld [vmem:[%s812_s0] sm:$0xff]  ;;  %v579_v7 = vld [vmem:[%s809_s3 + $0x8] sm:$0xff]  ;;  %v585_v12 = vld [vmem:[%s811_s5 + $0x18] sm:$0xff] }
   0x4   :  { %v578_v8 = vld [vmem:[%s809_s3] sm:$0xff]  ;;  %v587_v10 = vld [vmem:[%s811_s5 + $0x28] sm:$0xff]  ;;  %v584_v13 = vld [vmem:[%s811_s5 + $0x10] sm:$0xff] }
   0x5   :  { %v575_v9 = vld [vmem:[%s813_s1] sm:$0xff]  ;;  %v583_v14 = vld [vmem:[%s811_s5 + $0x8] sm:$0xff]  ;;  %v597_v28 = vld [vmem:[%s818_s7 + $0x38] sm:$0xff] }
   0x6   :  { %90 = vmatpush.bf16.msra.mxu0 %v580_v2  ;;  %127 = vmatpush.bf16.msra.mxu1 %v576_v3  ;;  %v586_v11 = vld [vmem:[%s811_s5 + $0x20] sm:$0xff]  ;;  %v596_v29 = vld [vmem:[%s818_s7 + $0x30] sm:$0xff]  ;;  %v595_v30 = vld [vmem:[%s818_s7 + $0x28] sm:$0xff] }
   0x7   :  { %212 = vmatpush.bf16.msra.mxu2 %v588_v5  ;;  %v582_v15 = vld [vmem:[%s811_s5] sm:$0xff]  ;;  %296 = vmatpush.bf16.msra.mxu3 %v597_v28  ;;  %v593_v32 = vld [vmem:[%s818_s7 + $0x18] sm:$0xff]  ;;  %v592_v33 = vld [vmem:[%s818_s7 + $0x10] sm:$0xff] }
   0x8   :  { %v603_v17 = vld [vmem:[%s814_s4] ss:$0 sm:$0xff]  ;;  %v591_v34 = vld [vmem:[%s818_s7 + $0x8] sm:$0xff] }
   0x9   :  { %505 = vmatmul.msk.bf16.vlgmr.msra.gmra.mxu1 %vm116_vm0, %v574_v6  ;;  %v594_v31 = vld [vmem:[%s818_s7 + $0x20] sm:$0xff] }
   0xa   :  { %91 = vmatpush.bf16.msra.mxu0 %v579_v7  ;;  %v590_v35 = vld [vmem:[%s818_s7] sm:$0xff] }
   0xb   :  { %213 = vmatpush.bf16.msra.mxu2 %v587_v10  ;;  %297 = vmatpush.bf16.msra.mxu3 %v596_v29  ;;  %v604_v37 = vld [vmem:[%s815_s6] ss:$0 sm:$0xff]  ;;  %s632_s6 = smov 64  }
   0xc   :  { %v605_v44 = vld [vmem:[%s816_s8] ss:$0 sm:$0xff]  ;;  %s633_s8 = smov 4  }
   0xd   :  { %v606_v45 = vld [vmem:[%s817_s9] ss:$0 sm:$0xff]  ;;  %s634_s9 = smov 66  }
   0xe   :  { %92 = vmatpush.bf16.msra.mxu0 %v578_v8 }
   0xf   :  { %214 = vmatpush.bf16.msra.mxu2 %v586_v11  ;;  %298 = vmatpush.bf16.msra.mxu3 %v595_v30 }
  0x11   :  { %492 = vmatmul.msk.bf16.vlgmr.msra.gmra.mxu0 %vm81_vm1, %v575_v9 }
  0x13   :  { %215 = vmatpush.bf16.msra.mxu2 %v585_v12  ;;  %299 = vmatpush.bf16.msra.mxu3 %v594_v31 }
  0x17   :  { %216 = vmatpush.bf16.msra.mxu2 %v584_v13  ;;  %300 = vmatpush.bf16.msra.mxu3 %v593_v32 }
  0x1b   :  { %217 = vmatpush.bf16.msra.mxu2 %v583_v14  ;;  %301 = vmatpush.bf16.msra.mxu3 %v592_v33 }
  0x1f   :  { %218 = vmatpush.bf16.msra.mxu2 %v582_v15  ;;  %302 = vmatpush.bf16.msra.mxu3 %v591_v34 }
  0x23   :  { %303 = vmatpush.bf16.msra.mxu3 %v590_v35 }
  0x86   :  { %v129_v16 = vpop.f32.mrf.mxu1 }
  0x8e   :  { %v94_v18 = vpop.f32.mrf.mxu0  ;;  %v131_v21 = vpop.f32.mrf.mxu1 }
  0x8f   :  { %v130_v19 = vadd.f32 %v129_v16, %v94_v18 }
  0x91   :  { %v138_v20 = vadd.f32 %v603_v17, %v130_v19 }
  0x93   :  { %322 = vrot.lane.b32.xlu1 %v138_v20, %s631_s23  ;;  %v140_v25 = vmax.f32 %v138_v20, 0.0 }
  0x96   :  { %v96_v22 = vpop.f32.mrf.mxu0 }
  0x97   :  { %v132_v23 = vadd.f32 %v131_v21, %v96_v22 }
  0x99   :  { %v139_v24 = vadd.f32 %v603_v17, %v132_v23 }
  0x9b   :  { %324 = vrot.lane.b32.xlu1 %v139_v24, %s631_s23  ;;  %v141_v26 = vmax.f32 %v139_v24, 0.0 }
  0x9d   :  { %v142_v27 = vpack.c.bf16 %v141_v26, %v140_v25 }
  0x9f   :  { %219 = vmatmul.bf16.vlgmr.msra.gmra.mxu2 %v142_v27 }
 0x105   :  { %v323_v20 = vpop.permute.xlu1 %322 }
 0x10d   :  { %v325_v27 = vpop.permute.xlu1 %324 }
 0x122   :  { %v220_v36 = vpop.f32.mrf.mxu2 }
 0x123   :  { %v769_v38 = vadd.f32 %v604_v37, %v220_v36 }
 0x125   :  { %v225_v41 = vmax.f32 %v769_v38, 0.0 }
 0x12a   :  { %v222_v39 = vpop.f32.mrf.mxu2 }
 0x12b   :  { %v771_v40 = vadd.f32 %v604_v37, %v222_v39 }
 0x12d   :  { %v226_v42 = vmax.f32 %v771_v40, 0.0 }
 0x12f   :  { %v227_v43 = vpack.c.bf16 %v226_v42, %v225_v41 }
 0x131   :  { %304 = vmatmul.bf16.vlgmr.msra.gmra.mxu3 %v227_v43 }
 0x1b4   :  { %v305_v46 = vpop.f32.mrf.mxu3 }
 0x1b5   :  { %v781_v47 = vadd.f32 %v605_v44, %v305_v46 }
 0x1b7   :  { %v378_v48 = vadd.f32 %v606_v45, %v781_v47  ;;  %312 = vrot.lane.b32.xlu0 %v781_v47, %s632_s6 }
 0x1b9   :  { %v572_v49 = vmul.f32 -1.442695, %v378_v48 }
 0x1bb   :  { %607 = vpow2.f32 %v572_v49 }
 0x1bc   :  { %v307_v50 = vpop.f32.mrf.mxu3 }
 0x1bd   :  { %v786_v51 = vadd.f32 %v605_v44, %v307_v50 }
 0x1bf   :  { %v379_v52 = vadd.f32 %v606_v45, %v786_v51  ;;  %314 = vrot.lane.b32.xlu0 %v786_v51, %s632_s6 }
 0x1c1   :  { %v608_v53 = vpop.eup %607  ;;  %v573_v54 = vmul.f32 -1.442695, %v379_v52 }
 0x1c2   :  { %v386_v55 = vadd.f32 1.0, %v608_v53 }
 0x1c3   :  { %609 = vpow2.f32 %v573_v54 }
 0x1c4   :  { %611 = vrcp.f32 %v386_v55  ;;  %v399_v61 = vand.u32 2147483648, %v386_v55  ;;  %v397_v63 = vand.u32 2147483647, %v386_v55  ;;  %vm393_vm3 = vweird.f32 %v386_v55 }
 0x1c6   :  { %v400_v2 = vor.u32 1.1754944e-38, %v399_v61  ;;  %vm398_vm5 = vcmp.eq.f32.partialorder %v397_v63, 8.507059e+37 }
 0x1c9   :  { %v610_v56 = vpop.eup %609 }
 0x1ca   :  { %v612_v57 = vpop.eup %611  ;;  %v387_v58 = vadd.f32 1.0, %v610_v56 }
 0x1cb   :  { %v389_v59 = vmul.f32 %v612_v57, %v386_v55  ;;  %vm394_vm2 = vweird.f32 %v612_v57 }
 0x1cc   :  { %613 = vrcp.f32 %v387_v58  ;;  %vm395_vm4 = vmor %vm393_vm3, %vm394_vm2  ;;  %v414_v8 = vand.u32 2147483648, %v387_v58  ;;  %v412_v10 = vand.u32 2147483647, %v387_v58  ;;  %vm408_vm7 = vweird.f32 %v387_v58 }
 0x1cd   :  { %v390_v60 = vsub.f32 1.0, %v389_v59  ;;  %vm456_vm2 = vcmask 15360   ;;  %vm462_vm3 = vcmask 48128  }
 0x1ce   :  { %v415_v12 = vor.u32 1.1754944e-38, %v414_v8  ;;  %vm413_vm9 = vcmp.eq.f32.partialorder %v412_v10, 8.507059e+37 }
 0x1cf   :  { %v391_v62 = vmul.f32 %v612_v57, %v390_v60 }
 0x1d1   :  { %v392_v0 = vadd.f32 %v612_v57, %v391_v62 }
 0x1d2   :  { %v614_v1 = vpop.eup %613 }
 0x1d3   :  { %v396_v3 = vsel %vm395_vm4, %v612_v57, %v392_v0  ;;  %v404_v4 = vmul.f32 %v614_v1, %v387_v58  ;;  %vm409_vm6 = vweird.f32 %v614_v1  ;;  %vm459_vm4 = vcmask 31744  }
 0x1d4   :  { %v401_v5 = vsel %vm398_vm5, %v400_v2, %v396_v3  ;;  %vm410_vm8 = vmor %vm408_vm7, %vm409_vm6  ;;  %vm465_vm5 = vcmask 64512  }
 0x1d5   :  { %v418_v6 = vadd.f32 1e-12, %v401_v5  ;;  %v405_v7 = vsub.f32 1.0, %v404_v4 }
 0x1d7   :  { %615 = vlog2.f32 %v418_v6  ;;  %v406_v9 = vmul.f32 %v614_v1, %v405_v7 }
 0x1d9   :  { %v407_v11 = vadd.f32 %v614_v1, %v406_v9 }
 0x1db   :  { %v411_v13 = vsel %vm410_vm8, %v614_v1, %v407_v11 }
 0x1dc   :  { %v416_v14 = vsel %vm413_vm9, %v415_v12, %v411_v13 }
 0x1dd   :  { %v616_v15 = vpop.eup %615  ;;  %v419_v16 = vadd.f32 1e-12, %v416_v14 }
 0x1de   :  { %v421_v17 = vmul.f32 0.6931472, %v616_v15 }
 0x1df   :  { %617 = vlog2.f32 %v419_v16 }
 0x1e0   :  { %426 = vrot.lane.b32.xlu2 %v421_v17, %s632_s6 }
 0x1e5   :  { %v618_v18 = vpop.eup %617 }
 0x1e6   :  { %v792_v19 = vmul.f32 0.6931472, %v618_v18 }
 0x1e8   :  { %428 = vrot.lane.b32.xlu2 %v792_v19, %s632_s6 }
 0x1f0   :  { %442 = vrot.lane.b32.xlu2 %v421_v17, %s633_s8 }
 0x229   :  { %v313_v21 = vpop.permute.xlu0 %312 }
 0x22a   :  { %v318_v22 = vadd.f32 %v313_v21, %v769_v38 }
 0x22c   :  { %v328_v23 = vadd.f32 %v323_v20, %v318_v22 }
 0x22e   :  { %v570_v24 = vmul.f32 -1.442695, %v328_v23 }
 0x230   :  { %619 = vpow2.f32 %v570_v24 }
 0x231   :  { %v315_v25 = vpop.permute.xlu0 %314 }
 0x232   :  { %v319_v26 = vadd.f32 %v315_v25, %v771_v40 }
 0x234   :  { %v329_v28 = vadd.f32 %v325_v27, %v319_v26 }
 0x236   :  { %v620_v29 = vpop.eup %619  ;;  %v571_v30 = vmul.f32 -1.442695, %v329_v28 }
 0x237   :  { %v336_v31 = vadd.f32 1.0, %v620_v29 }
 0x238   :  { %621 = vpow2.f32 %v571_v30 }
 0x239   :  { %623 = vrcp.f32 %v336_v31  ;;  %v349_v37 = vand.u32 2147483648, %v336_v31  ;;  %v347_v39 = vand.u32 2147483647, %v336_v31  ;;  %vm343_vm11 = vweird.f32 %v336_v31 }
 0x23a   :  { %v427_v58 = vpop.permute.xlu2 %426 }
 0x23b   :  { %v350_v42 = vor.u32 1.1754944e-38, %v349_v37  ;;  %vm348_vm13 = vcmp.eq.f32.partialorder %v347_v39, 8.507059e+37 }
 0x23e   :  { %v622_v32 = vpop.eup %621 }
 0x23f   :  { %v624_v33 = vpop.eup %623  ;;  %v337_v34 = vadd.f32 1.0, %v622_v32 }
 0x240   :  { %v339_v35 = vmul.f32 %v624_v33, %v336_v31  ;;  %vm344_vm10 = vweird.f32 %v624_v33 }
 0x241   :  { %625 = vrcp.f32 %v337_v34  ;;  %vm345_vm12 = vmor %vm343_vm11, %vm344_vm10  ;;  %v364_v49 = vand.u32 2147483648, %v337_v34  ;;  %v362_v52 = vand.u32 2147483647, %v337_v34  ;;  %vm358_vm15 = vweird.f32 %v337_v34 }
 0x242   :  { %v340_v36 = vsub.f32 1.0, %v339_v35  ;;  %v429_v63 = vpop.permute.xlu2 %428 }
 0x243   :  { %v365_v54 = vor.u32 1.1754944e-38, %v364_v49  ;;  %vm363_vm1 = vcmp.eq.f32.partialorder %v362_v52, 8.507059e+37 }
 0x244   :  { %v341_v38 = vmul.f32 %v624_v33, %v340_v36 }
 0x246   :  { %v342_v41 = vadd.f32 %v624_v33, %v341_v38 }
 0x247   :  { %v626_v40 = vpop.eup %625 }
 0x248   :  { %v346_v43 = vsel %vm345_vm12, %v624_v33, %v342_v41  ;;  %v354_v44 = vmul.f32 %v626_v40, %v337_v34  ;;  %vm359_vm14 = vweird.f32 %v626_v40 }
 0x249   :  { %v351_v45 = vsel %vm348_vm13, %v350_v42, %v346_v43  ;;  %vm360_vm0 = vmor %vm358_vm15, %vm359_vm14 }
 0x24a   :  { %v368_v46 = vadd.f32 1e-12, %v351_v45  ;;  %v355_v48 = vsub.f32 1.0, %v354_v44  ;;  %v443_v3 = vpop.permute.xlu2 %442 }
 0x24c   :  { %627 = vlog2.f32 %v368_v46  ;;  %v356_v50 = vmul.f32 %v626_v40, %v355_v48 }
 0x24e   :  { %v357_v53 = vadd.f32 %v626_v40, %v356_v50 }
 0x250   :  { %v361_v55 = vsel %vm360_vm0, %v626_v40, %v357_v53 }
 0x251   :  { %v366_v56 = vsel %vm363_vm1, %v365_v54, %v361_v55 }
 0x252   :  { %v628_v57 = vpop.eup %627  ;;  %v369_v59 = vadd.f32 1e-12, %v366_v56 }
 0x253   :  { %v371_v60 = vmul.f32 0.6931472, %v628_v57 }
 0x254   :  { %629 = vlog2.f32 %v369_v59 }
 0x255   :  { %436 = vrot.lane.b32.xlu0 %v371_v60, %s634_s9  ;;  %v432_v1 = vsub.f32 %v371_v60, %v427_v58 }
 0x25a   :  { %v630_v61 = vpop.eup %629 }
 0x25b   :  { %v373_v62 = vmul.f32 0.6931472, %v630_v61 }
 0x25d   :  { %v433_v0 = vsub.f32 %v373_v62, %v429_v63  ;;  %444 = vrot.lane.b32.xlu0 %v792_v19, %s633_s8  ;;  %438 = vrot.lane.b32.xlu1 %v373_v62, %s634_s9 }
 0x25f   :  { %452 = vrot.lane.b32.xlu2 %v433_v0, %s635_s19 }
 0x265   :  { %450 = vrot.lane.b32.xlu1 %v432_v1, %s635_s19 }
 0x2b9   :  { %v453_v7 = vpop.permute.xlu2 %452 }
 0x2c7   :  { %v437_v2 = vpop.permute.xlu0 %436 }
 0x2c8   :  { %v457_v10 = vsel %vm456_vm2, %v781_v47, %v437_v2 }
 0x2c9   :  { %v460_v12 = vsel %vm459_vm4, %v457_v10, %v443_v3 }
 0x2cf   :  { %v439_v4 = vpop.permute.xlu1 %438  ;;  %v445_v5 = vpop.permute.xlu0 %444 }
 0x2d0   :  { %v458_v6 = vsel %vm456_vm2, %v786_v51, %v439_v4 }
 0x2d1   :  { %v461_v8 = vsel %vm459_vm4, %v458_v6, %v445_v5 }
 0x2d2   :  { %v464_v9 = vsel %vm462_vm3, %v461_v8, %v453_v7 }
 0x2d3   :  { %467 = vst.msk [vmem:[%s819_s10 + $0x8] sm:$0xff] %vm465_vm5, %v464_v9 }
 0x2d7   :  { %v451_v11 = vpop.permute.xlu1 %450 }
 0x2d8   :  { %v463_v13 = vsel %vm462_vm3, %v460_v12, %v451_v11 }
 0x2d9   :  { %466 = vst.msk [vmem:[%s819_s10] sm:$0xff] %vm465_vm5, %v463_v13 }

// kernel: dkt_core_device.4
= control target key start
LH: loop header
LB: loop body
LE: loop exit
PB: predicated region body
PF: predicated region fallthrough
CT: control target
= control target key end

     0   :  { %vm15_vm0 = vcmask 254976   ;;  %v681_v2 = vmov 0.0   ;;  %vm25_vm1 = vcmask 261120   ;;  %s682_s18 = smov 64   ;;  %s683_s19 = smov 32   ;;  %s813_s1 = inlined_call_operand.vmem [shape: f32[32,128], index: 1, kind: input, shape index: {}]   ;;  %s814_s0 = inlined_call_operand.vmem [shape: f32[8,2,128], index: 0, kind: input, shape index: {}]   ;;  %s815_s2 = inlined_call_operand.vmem [shape: f32[8,2,32], index: 2, kind: output, shape index: {}]  }
   0x1   :  { %v21_v0 = vld [vmem:[%s813_s1 + $0x18] sm:$0xff]  ;;  %v20_v1 = vld [vmem:[%s813_s1 + $0x10] sm:$0xff]  ;;  %16 = vst.msk [vmem:[#allocation2] sm:$0x3] %vm15_vm0, %v681_v2  ;;  %v19_v3 = vld [vmem:[%s813_s1 + $0x8] sm:$0xff] }
   0x2   :  { %41 = vmatpush.msra.mxu0 %v21_v0  ;;  %17 = vst.msk [vmem:[#allocation3] sm:$0x3] %vm15_vm0, %v681_v2  ;;  %113 = vmatpush.msra.mxu1 %v21_v0  ;;  %v18_v4 = vld [vmem:[%s813_s1] sm:$0xff] }
   0x3   :  { %181 = vmatpush.msra.mxu2 %v21_v0  ;;  %249 = vmatpush.msra.mxu3 %v21_v0  ;;  %v24_v6 = vld [vmem:[%s814_s0] sm:$0x3]  ;;  %v585_v34 = vld [vmem:[%s814_s0 + $0x2] sm:$0x3]  ;;  %v589_v60 = vld [vmem:[%s814_s0 + $0x4] sm:$0x3] }
   0x4   :  { %42 = vmatpush.msra.mxu0 %v20_v1  ;;  %114 = vmatpush.msra.mxu1 %v20_v1 }
   0x5   :  { %182 = vmatpush.msra.mxu2 %v20_v1  ;;  %250 = vmatpush.msra.mxu3 %v20_v1 }
   0x6   :  { %43 = vmatpush.msra.mxu0 %v19_v3  ;;  %115 = vmatpush.msra.mxu1 %v19_v3 }
   0x7   :  { %183 = vmatpush.msra.mxu2 %v19_v3  ;;  %251 = vmatpush.msra.mxu3 %v19_v3 }
   0x8   :  { %44 = vmatpush.msra.mxu0 %v18_v4  ;;  %v22_v5 = vld [vmem:[#allocation2] sm:$0x3]  ;;  %116 = vmatpush.msra.mxu1 %v18_v4 }
   0x9   :  { %583 = vmatmul.msk.f32.vlgmr.msra.gmra.mxu0 %vm25_vm1, %v22_v5  ;;  %184 = vmatpush.msra.mxu2 %v18_v4  ;;  %v23_v10 = vld [vmem:[#allocation3] sm:$0x3] }
   0xa   :  { %252 = vmatpush.msra.mxu3 %v18_v4  ;;  %317 = vmatpush.msrb.mxu0 %v21_v0 }
   0xb   :  { %385 = vmatpush.msrb.mxu1 %v21_v0  ;;  %453 = vmatpush.msrb.mxu2 %v21_v0 }
   0xc   :  { %318 = vmatpush.msrb.mxu0 %v20_v1  ;;  %521 = vmatpush.msrb.mxu3 %v21_v0 }
   0xd   :  { %386 = vmatpush.msrb.mxu1 %v20_v1  ;;  %454 = vmatpush.msrb.mxu2 %v20_v1 }
   0xe   :  { %319 = vmatpush.msrb.mxu0 %v19_v3  ;;  %522 = vmatpush.msrb.mxu3 %v20_v1 }
   0xf   :  { %387 = vmatpush.msrb.mxu1 %v19_v3  ;;  %455 = vmatpush.msrb.mxu2 %v19_v3 }
  0x10   :  { %320 = vmatpush.msrb.mxu0 %v18_v4  ;;  %523 = vmatpush.msrb.mxu3 %v19_v3 }
  0x11   :  { %388 = vmatpush.msrb.mxu1 %v18_v4  ;;  %456 = vmatpush.msrb.mxu2 %v18_v4 }
  0x12   :  { %524 = vmatpush.msrb.mxu3 %v18_v4 }
  0x86   :  { %v46_v7 = vpop.f32.mrf.mxu0 }
  0x87   :  { %v49_v8 = vadd.f32 %v46_v7, %v24_v6 }
  0x89   :  { %617 = vtanh.f32 %v49_v8  ;;  %v584_v11 = vmul.f32 -1.442695, %v49_v8 }
  0x8b   :  { %619 = vpow2.f32 %v584_v11 }
  0x8f   :  { %v618_v9 = vpop.eup %617 }
  0x90   :  { %76 = vrot.lane.b32.xlu0 %v618_v9, %s682_s18 }
  0x91   :  { %v620_v12 = vpop.eup %619 }
  0x92   :  { %v53_v13 = vadd.f32 1.0, %v620_v12 }
  0x94   :  { %621 = vrcp.f32 %v53_v13  ;;  %v65_v19 = vand.u32 2147483648, %v53_v13  ;;  %vm59_vm3 = vweird.f32 %v53_v13  ;;  %v63_v20 = vand.u32 2147483647, %v53_v13 }
  0x96   :  { %v66_v22 = vor.u32 1.1754944e-38, %v65_v19  ;;  %vm64_vm5 = vcmp.eq.f32.partialorder %v63_v20, 8.507059e+37 }
  0x98   :  { %71 = vrot.lane.b32.xlu0 %v23_v10, %s683_s19 }
  0x9a   :  { %v622_v14 = vpop.eup %621 }
  0x9b   :  { %v55_v15 = vmul.f32 %v622_v14, %v53_v13  ;;  %vm60_vm2 = vweird.f32 %v622_v14 }
  0x9c   :  { %vm61_vm4 = vmor %vm59_vm3, %vm60_vm2 }
  0x9d   :  { %v56_v16 = vsub.f32 1.0, %v55_v15 }
  0x9f   :  { %v57_v17 = vmul.f32 %v622_v14, %v56_v16 }
  0xa1   :  { %v58_v18 = vadd.f32 %v622_v14, %v57_v17 }
  0xa3   :  { %v62_v21 = vsel %vm61_vm4, %v622_v14, %v58_v18 }
  0xa4   :  { %v67_v24 = vsel %vm64_vm5, %v66_v22, %v62_v21  ;;  %v593_v22 = vld [vmem:[%s814_s0 + $0x6] sm:$0x3] }
 0x102   :  { %v77_v23 = vpop.permute.xlu0 %76 }
 0x103   :  { %v79_v25 = vmul.f32 %v77_v23, %v67_v24 }
 0x105   :  { %81 = vrot.lane.b32.xlu1 %v79_v25, %s683_s19 }
 0x10a   :  { %v72_v26 = vpop.permute.xlu0 %71 }
 0x10b   :  { %v74_v27 = vmul.f32 %v72_v26, %v67_v24 }
 0x177   :  { %v82_v28 = vpop.permute.xlu1 %81 }
 0x178   :  { %v84_v29 = vadd.f32 %v82_v28, %v74_v27 }
 0x17a   :  { %623 = vtanh.f32 %v84_v29 }
 0x180   :  { %v624_v30 = vpop.eup %623 }
 0x181   :  { %87 = vrot.lane.b32.xlu1 %v624_v30, %s682_s18 }
 0x1f3   :  { %v88_v31 = vpop.permute.xlu1 %87 }
 0x1f4   :  { %v90_v32 = vmul.f32 %v88_v31, %v67_v24 }
 0x1f6   :  { %92 = vrot.lane.b32.xlu2 %v90_v32, %s683_s19 }
 0x250   :  { %v93_v33 = vpop.permute.xlu2 %92 }
 0x251   :  { %96 = vst.msk [vmem:[%s815_s2] sm:$0x3] %vm15_vm0, %v93_v33  ;;  %586 = vmatmul.msk.f32.vlgmr.msra.gmra.mxu1 %vm25_vm1, %v93_v33 }
 0x2ce   :  { %v118_v35 = vpop.f32.mrf.mxu1 }
 0x2cf   :  { %v121_v36 = vadd.f32 %v585_v34, %v118_v35 }
 0x2d1   :  { %625 = vtanh.f32 %v121_v36  ;;  %v587_v38 = vmul.f32 -1.442695, %v121_v36 }
 0x2d3   :  { %627 = vpow2.f32 %v587_v38 }
 0x2d7   :  { %v626_v37 = vpop.eup %625 }
 0x2d8   :  { %144 = vrot.lane.b32.xlu2 %v626_v37, %s682_s18 }
 0x2d9   :  { %v628_v39 = vpop.eup %627 }
 0x2da   :  { %v125_v40 = vadd.f32 1.0, %v628_v39 }
 0x2dc   :  { %629 = vrcp.f32 %v125_v40  ;;  %v137_v46 = vand.u32 2147483648, %v125_v40  ;;  %vm131_vm7 = vweird.f32 %v125_v40  ;;  %v135_v47 = vand.u32 2147483647, %v125_v40 }
 0x2de   :  { %v138_v49 = vor.u32 1.1754944e-38, %v137_v46  ;;  %vm136_vm9 = vcmp.eq.f32.partialorder %v135_v47, 8.507059e+37 }
 0x2e2   :  { %v630_v41 = vpop.eup %629 }
 0x2e3   :  { %v127_v42 = vmul.f32 %v630_v41, %v125_v40  ;;  %vm132_vm6 = vweird.f32 %v630_v41 }
 0x2e4   :  { %vm133_vm8 = vmor %vm131_vm7, %vm132_vm6 }
 0x2e5   :  { %v128_v43 = vsub.f32 1.0, %v127_v42 }
 0x2e7   :  { %v129_v44 = vmul.f32 %v630_v41, %v128_v43 }
 0x2e9   :  { %v130_v45 = vadd.f32 %v630_v41, %v129_v44 }
 0x2eb   :  { %v134_v48 = vsel %vm133_vm8, %v630_v41, %v130_v45 }
 0x2ec   :  { %v139_v51 = vsel %vm136_vm9, %v138_v49, %v134_v48  ;;  %v597_v48 = vld [vmem:[%s814_s0 + $0x8] sm:$0x3] }
 0x2ed   :  { %v142_v53 = vmul.f32 %v139_v51, %v84_v29 }
 0x332   :  { %v145_v50 = vpop.permute.xlu2 %144 }
 0x333   :  { %v147_v52 = vmul.f32 %v145_v50, %v139_v51 }
 0x335   :  { %149 = vrot.lane.b32.xlu0 %v147_v52, %s683_s19 }
 0x3a7   :  { %v150_v54 = vpop.permute.xlu0 %149 }
 0x3a8   :  { %v152_v55 = vadd.f32 %v150_v54, %v142_v53 }
 0x3aa   :  { %631 = vtanh.f32 %v152_v55 }
 0x3b0   :  { %v632_v56 = vpop.eup %631 }
 0x3b1   :  { %155 = vrot.lane.b32.xlu1 %v632_v56, %s682_s18 }
 0x423   :  { %v156_v57 = vpop.permute.xlu1 %155 }
 0x424   :  { %v158_v58 = vmul.f32 %v156_v57, %v139_v51 }
 0x426   :  { %160 = vrot.lane.b32.xlu2 %v158_v58, %s683_s19 }
 0x480   :  { %v161_v59 = vpop.permute.xlu2 %160 }
 0x481   :  { %588 = vst.msk [vmem:[%s815_s2 + $0x2] sm:$0x3] %vm15_vm0, %v161_v59  ;;  %590 = vmatmul.msk.f32.vlgmr.msra.gmra.mxu2 %vm25_vm1, %v161_v59 }
 0x504   :  { %v186_v61 = vpop.f32.mrf.mxu2 }
 0x505   :  { %v189_v62 = vadd.f32 %v589_v60, %v186_v61 }
 0x507   :  { %633 = vtanh.f32 %v189_v62  ;;  %v591_v0 = vmul.f32 -1.442695, %v189_v62 }
 0x509   :  { %635 = vpow2.f32 %v591_v0 }
 0x50d   :  { %v634_v63 = vpop.eup %633 }
 0x50e   :  { %212 = vrot.lane.b32.xlu0 %v634_v63, %s682_s18 }
 0x50f   :  { %v636_v1 = vpop.eup %635 }
 0x510   :  { %v193_v2 = vadd.f32 1.0, %v636_v1 }
 0x512   :  { %637 = vrcp.f32 %v193_v2  ;;  %v205_v8 = vand.u32 2147483648, %v193_v2  ;;  %vm199_vm11 = vweird.f32 %v193_v2  ;;  %v203_v9 = vand.u32 2147483647, %v193_v2 }
 0x514   :  { %v206_v11 = vor.u32 1.1754944e-38, %v205_v8  ;;  %vm204_vm13 = vcmp.eq.f32.partialorder %v203_v9, 8.507059e+37 }
 0x518   :  { %v638_v3 = vpop.eup %637 }
 0x519   :  { %v195_v4 = vmul.f32 %v638_v3, %v193_v2  ;;  %vm200_vm10 = vweird.f32 %v638_v3 }
 0x51a   :  { %vm201_vm12 = vmor %vm199_vm11, %vm200_vm10 }
 0x51b   :  { %v196_v5 = vsub.f32 1.0, %v195_v4 }
 0x51d   :  { %v197_v6 = vmul.f32 %v638_v3, %v196_v5 }
 0x51f   :  { %v198_v7 = vadd.f32 %v638_v3, %v197_v6 }
 0x521   :  { %v202_v10 = vsel %vm201_vm12, %v638_v3, %v198_v7 }
 0x522   :  { %v207_v13 = vsel %vm204_vm13, %v206_v11, %v202_v10  ;;  %v601_v10 = vld [vmem:[%s814_s0 + $0xa] sm:$0x3] }
 0x523   :  { %v210_v15 = vmul.f32 %v207_v13, %v152_v55 }
 0x580   :  { %v213_v12 = vpop.permute.xlu0 %212 }
 0x581   :  { %v215_v14 = vmul.f32 %v213_v12, %v207_v13 }
 0x583   :  { %217 = vrot.lane.b32.xlu1 %v215_v14, %s683_s19 }
 0x5f5   :  { %v218_v16 = vpop.permute.xlu1 %217 }
 0x5f6   :  { %v220_v17 = vadd.f32 %v218_v16, %v210_v15 }
 0x5f8   :  { %639 = vtanh.f32 %v220_v17 }
 0x5fe   :  { %v640_v18 = vpop.eup %639 }
 0x5ff   :  { %223 = vrot.lane.b32.xlu2 %v640_v18, %s682_s18 }
 0x659   :  { %v224_v19 = vpop.permute.xlu2 %223 }
 0x65a   :  { %v226_v20 = vmul.f32 %v224_v19, %v207_v13 }
 0x65c   :  { %228 = vrot.lane.b32.xlu0 %v226_v20, %s683_s19 }
 0x6ce   :  { %v229_v21 = vpop.permute.xlu0 %228 }
 0x6cf   :  { %592 = vst.msk [vmem:[%s815_s2 + $0x4] sm:$0x3] %vm15_vm0, %v229_v21  ;;  %594 = vmatmul.msk.f32.vlgmr.msra.gmra.mxu3 %vm25_vm1, %v229_v21 }
 0x752   :  { %v254_v23 = vpop.f32.mrf.mxu3 }
 0x753   :  { %v257_v24 = vadd.f32 %v593_v22, %v254_v23 }
 0x755   :  { %641 = vtanh.f32 %v257_v24  ;;  %v595_v26 = vmul.f32 -1.442695, %v257_v24 }
 0x757   :  { %643 = vpow2.f32 %v595_v26 }
 0x75b   :  { %v642_v25 = vpop.eup %641 }
 0x75c   :  { %280 = vrot.lane.b32.xlu1 %v642_v25, %s682_s18 }
 0x75d   :  { %v644_v27 = vpop.eup %643 }
 0x75e   :  { %v261_v28 = vadd.f32 1.0, %v644_v27 }
 0x760   :  { %645 = vrcp.f32 %v261_v28  ;;  %v273_v34 = vand.u32 2147483648, %v261_v28  ;;  %vm267_vm15 = vweird.f32 %v261_v28  ;;  %v271_v35 = vand.u32 2147483647, %v261_v28 }
 0x762   :  { %v274_v37 = vor.u32 1.1754944e-38, %v273_v34  ;;  %vm272_vm3 = vcmp.eq.f32.partialorder %v271_v35, 8.507059e+37 }
 0x766   :  { %v646_v29 = vpop.eup %645 }
 0x767   :  { %v263_v30 = vmul.f32 %v646_v29, %v261_v28  ;;  %vm268_vm14 = vweird.f32 %v646_v29 }
 0x768   :  { %vm269_vm2 = vmor %vm267_vm15, %vm268_vm14 }
 0x769   :  { %v264_v31 = vsub.f32 1.0, %v263_v30 }
 0x76b   :  { %v265_v32 = vmul.f32 %v646_v29, %v264_v31 }
 0x76d   :  { %v266_v33 = vadd.f32 %v646_v29, %v265_v32 }
 0x76f   :  { %v270_v36 = vsel %vm269_vm2, %v646_v29, %v266_v33 }
 0x770   :  { %v275_v39 = vsel %vm272_vm3, %v274_v37, %v270_v36  ;;  %v605_v36 = vld [vmem:[%s814_s0 + $0xc] sm:$0x3] }
 0x771   :  { %v278_v41 = vmul.f32 %v275_v39, %v220_v17 }
 0x7ce   :  { %v281_v38 = vpop.permute.xlu1 %280 }
 0x7cf   :  { %v283_v40 = vmul.f32 %v281_v38, %v275_v39 }
 0x7d1   :  { %285 = vrot.lane.b32.xlu2 %v283_v40, %s683_s19 }
 0x82b   :  { %v286_v42 = vpop.permute.xlu2 %285 }
 0x82c   :  { %v288_v43 = vadd.f32 %v286_v42, %v278_v41 }
 0x82e   :  { %647 = vtanh.f32 %v288_v43 }
 0x834   :  { %v648_v44 = vpop.eup %647 }
 0x835   :  { %291 = vrot.lane.b32.xlu0 %v648_v44, %s682_s18 }
 0x8a7   :  { %v292_v45 = vpop.permute.xlu0 %291 }
 0x8a8   :  { %v294_v46 = vmul.f32 %v292_v45, %v275_v39 }
 0x8aa   :  { %296 = vrot.lane.b32.xlu1 %v294_v46, %s683_s19 }
 0x91c   :  { %v297_v47 = vpop.permute.xlu1 %296 }
 0x91d   :  { %596 = vst.msk [vmem:[%s815_s2 + $0x6] sm:$0x3] %vm15_vm0, %v297_v47  ;;  %598 = vmatmul.msk.f32.vlgmr.msrb.gmra.mxu0 %vm25_vm1, %v297_v47 }
 0x99a   :  { %v322_v49 = vpop.f32.mrf.mxu0 }
 0x99b   :  { %v325_v50 = vadd.f32 %v597_v48, %v322_v49 }
 0x99d   :  { %649 = vtanh.f32 %v325_v50  ;;  %v599_v52 = vmul.f32 -1.442695, %v325_v50 }
 0x99f   :  { %651 = vpow2.f32 %v599_v52 }
 0x9a3   :  { %v650_v51 = vpop.eup %649 }
 0x9a4   :  { %348 = vrot.lane.b32.xlu2 %v650_v51, %s682_s18 }
 0x9a5   :  { %v652_v53 = vpop.eup %651 }
 0x9a6   :  { %v329_v54 = vadd.f32 1.0, %v652_v53 }
 0x9a8   :  { %653 = vrcp.f32 %v329_v54  ;;  %v341_v60 = vand.u32 2147483648, %v329_v54  ;;  %vm335_vm5 = vweird.f32 %v329_v54  ;;  %v339_v61 = vand.u32 2147483647, %v329_v54 }
 0x9aa   :  { %v342_v63 = vor.u32 1.1754944e-38, %v341_v60  ;;  %vm340_vm7 = vcmp.eq.f32.partialorder %v339_v61, 8.507059e+37 }
 0x9ae   :  { %v654_v55 = vpop.eup %653 }
 0x9af   :  { %v331_v56 = vmul.f32 %v654_v55, %v329_v54  ;;  %vm336_vm4 = vweird.f32 %v654_v55 }
 0x9b0   :  { %vm337_vm6 = vmor %vm335_vm5, %vm336_vm4 }
 0x9b1   :  { %v332_v57 = vsub.f32 1.0, %v331_v56 }
 0x9b3   :  { %v333_v58 = vmul.f32 %v654_v55, %v332_v57 }
 0x9b5   :  { %v334_v59 = vadd.f32 %v654_v55, %v333_v58 }
 0x9b7   :  { %v338_v62 = vsel %vm337_vm6, %v654_v55, %v334_v59 }
 0x9b8   :  { %v343_v1 = vsel %vm340_vm7, %v342_v63, %v338_v62  ;;  %v609_v62 = vld [vmem:[%s814_s0 + $0xe] sm:$0x3]  ;;  %s684_s0 = smov 96  }
 0x9b9   :  { %v346_v3 = vmul.f32 %v343_v1, %v288_v43 }
 0x9fe   :  { %v349_v0 = vpop.permute.xlu2 %348 }
 0x9ff   :  { %v351_v2 = vmul.f32 %v349_v0, %v343_v1 }
 0xa01   :  { %353 = vrot.lane.b32.xlu0 %v351_v2, %s683_s19 }
 0xa73   :  { %v354_v4 = vpop.permute.xlu0 %353 }
 0xa74   :  { %v356_v5 = vadd.f32 %v354_v4, %v346_v3 }
 0xa76   :  { %655 = vtanh.f32 %v356_v5 }
 0xa7c   :  { %v656_v6 = vpop.eup %655 }
 0xa7d   :  { %359 = vrot.lane.b32.xlu1 %v656_v6, %s682_s18 }
 0xaef   :  { %v360_v7 = vpop.permute.xlu1 %359 }
 0xaf0   :  { %v362_v8 = vmul.f32 %v360_v7, %v343_v1 }
 0xaf2   :  { %364 = vrot.lane.b32.xlu2 %v362_v8, %s683_s19 }
 0xb4c   :  { %v365_v9 = vpop.permute.xlu2 %364 }
 0xb4d   :  { %600 = vst.msk [vmem:[%s815_s2 + $0x8] sm:$0x3] %vm15_vm0, %v365_v9  ;;  %602 = vmatmul.msk.f32.vlgmr.msrb.gmra.mxu1 %vm25_vm1, %v365_v9 }
 0xbca   :  { %v390_v11 = vpop.f32.mrf.mxu1 }
 0xbcb   :  { %v393_v12 = vadd.f32 %v601_v10, %v390_v11 }
 0xbcd   :  { %657 = vtanh.f32 %v393_v12  ;;  %v603_v14 = vmul.f32 -1.442695, %v393_v12 }
 0xbcf   :  { %659 = vpow2.f32 %v603_v14 }
 0xbd3   :  { %v658_v13 = vpop.eup %657 }
 0xbd4   :  { %416 = vrot.lane.b32.xlu0 %v658_v13, %s682_s18 }
 0xbd5   :  { %v660_v15 = vpop.eup %659 }
 0xbd6   :  { %v397_v16 = vadd.f32 1.0, %v660_v15 }
 0xbd8   :  { %661 = vrcp.f32 %v397_v16  ;;  %v409_v22 = vand.u32 2147483648, %v397_v16  ;;  %vm403_vm9 = vweird.f32 %v397_v16  ;;  %v407_v23 = vand.u32 2147483647, %v397_v16 }
 0xbda   :  { %v410_v25 = vor.u32 1.1754944e-38, %v409_v22  ;;  %vm408_vm11 = vcmp.eq.f32.partialorder %v407_v23, 8.507059e+37 }
 0xbde   :  { %v662_v17 = vpop.eup %661 }
 0xbdf   :  { %v399_v18 = vmul.f32 %v662_v17, %v397_v16  ;;  %vm404_vm8 = vweird.f32 %v662_v17 }
 0xbe0   :  { %vm405_vm10 = vmor %vm403_vm9, %vm404_vm8 }
 0xbe1   :  { %v400_v19 = vsub.f32 1.0, %v399_v18 }
 0xbe3   :  { %v401_v20 = vmul.f32 %v662_v17, %v400_v19 }
 0xbe5   :  { %v402_v21 = vadd.f32 %v662_v17, %v401_v20 }
 0xbe7   :  { %v406_v24 = vsel %vm405_vm10, %v662_v17, %v402_v21 }
 0xbe8   :  { %v411_v27 = vsel %vm408_vm11, %v410_v25, %v406_v24 }
 0xbe9   :  { %v414_v29 = vmul.f32 %v411_v27, %v356_v5 }
 0xc46   :  { %v417_v26 = vpop.permute.xlu0 %416 }
 0xc47   :  { %v419_v28 = vmul.f32 %v417_v26, %v411_v27 }
 0xc49   :  { %421 = vrot.lane.b32.xlu1 %v419_v28, %s683_s19 }
 0xcbb   :  { %v422_v30 = vpop.permute.xlu1 %421 }
 0xcbc   :  { %v424_v31 = vadd.f32 %v422_v30, %v414_v29 }
 0xcbe   :  { %663 = vtanh.f32 %v424_v31 }
 0xcc4   :  { %v664_v32 = vpop.eup %663 }
 0xcc5   :  { %427 = vrot.lane.b32.xlu2 %v664_v32, %s682_s18 }
 0xd1f   :  { %v428_v33 = vpop.permute.xlu2 %427 }
 0xd20   :  { %v430_v34 = vmul.f32 %v428_v33, %v411_v27 }
 0xd22   :  { %432 = vrot.lane.b32.xlu0 %v430_v34, %s683_s19 }
 0xd94   :  { %v433_v35 = vpop.permute.xlu0 %432 }
 0xd95   :  { %604 = vst.msk [vmem:[%s815_s2 + $0xa] sm:$0x3] %vm15_vm0, %v433_v35  ;;  %606 = vmatmul.msk.f32.vlgmr.msrb.gmra.mxu2 %vm25_vm1, %v433_v35 }
 0xe18   :  { %v458_v37 = vpop.f32.mrf.mxu2 }
 0xe19   :  { %v461_v38 = vadd.f32 %v605_v36, %v458_v37 }
 0xe1b   :  { %665 = vtanh.f32 %v461_v38  ;;  %v607_v40 = vmul.f32 -1.442695, %v461_v38 }
 0xe1d   :  { %667 = vpow2.f32 %v607_v40 }
 0xe21   :  { %v666_v39 = vpop.eup %665 }
 0xe22   :  { %484 = vrot.lane.b32.xlu1 %v666_v39, %s682_s18 }
 0xe23   :  { %v668_v41 = vpop.eup %667 }
 0xe24   :  { %v465_v42 = vadd.f32 1.0, %v668_v41 }
 0xe26   :  { %669 = vrcp.f32 %v465_v42  ;;  %v477_v48 = vand.u32 2147483648, %v465_v42  ;;  %vm471_vm13 = vweird.f32 %v465_v42  ;;  %v475_v49 = vand.u32 2147483647, %v465_v42 }
 0xe28   :  { %v478_v51 = vor.u32 1.1754944e-38, %v477_v48  ;;  %vm476_vm15 = vcmp.eq.f32.partialorder %v475_v49, 8.507059e+37 }
 0xe2c   :  { %v670_v43 = vpop.eup %669 }
 0xe2d   :  { %v467_v44 = vmul.f32 %v670_v43, %v465_v42  ;;  %vm472_vm12 = vweird.f32 %v670_v43 }
 0xe2e   :  { %vm473_vm14 = vmor %vm471_vm13, %vm472_vm12 }
 0xe2f   :  { %v468_v45 = vsub.f32 1.0, %v467_v44 }
 0xe31   :  { %v469_v46 = vmul.f32 %v670_v43, %v468_v45 }
 0xe33   :  { %v470_v47 = vadd.f32 %v670_v43, %v469_v46 }
 0xe35   :  { %v474_v50 = vsel %vm473_vm14, %v670_v43, %v470_v47 }
 0xe36   :  { %v479_v53 = vsel %vm476_vm15, %v478_v51, %v474_v50 }
 0xe37   :  { %v482_v55 = vmul.f32 %v479_v53, %v424_v31 }
 0xe94   :  { %v485_v52 = vpop.permute.xlu1 %484 }
 0xe95   :  { %v487_v54 = vmul.f32 %v485_v52, %v479_v53 }
 0xe97   :  { %489 = vrot.lane.b32.xlu2 %v487_v54, %s683_s19 }
 0xef1   :  { %v490_v56 = vpop.permute.xlu2 %489 }
 0xef2   :  { %v492_v57 = vadd.f32 %v490_v56, %v482_v55 }
 0xef4   :  { %671 = vtanh.f32 %v492_v57 }
 0xefa   :  { %v672_v58 = vpop.eup %671 }
 0xefb   :  { %495 = vrot.lane.b32.xlu0 %v672_v58, %s682_s18 }
 0xf6d   :  { %v496_v59 = vpop.permute.xlu0 %495 }
 0xf6e   :  { %v498_v60 = vmul.f32 %v496_v59, %v479_v53 }
 0xf70   :  { %500 = vrot.lane.b32.xlu1 %v498_v60, %s683_s19 }
 0xfe2   :  { %v501_v61 = vpop.permute.xlu1 %500 }
 0xfe3   :  { %608 = vst.msk [vmem:[%s815_s2 + $0xc] sm:$0x3] %vm15_vm0, %v501_v61  ;;  %610 = vmatmul.msk.f32.vlgmr.msrb.gmra.mxu3 %vm25_vm1, %v501_v61 }
0x1066   :  { %v526_v63 = vpop.f32.mrf.mxu3 }
0x1067   :  { %v529_v0 = vadd.f32 %v609_v62, %v526_v63 }
0x1069   :  { %673 = vtanh.f32 %v529_v0  ;;  %v611_v2 = vmul.f32 -1.442695, %v529_v0 }
0x106b   :  { %675 = vpow2.f32 %v611_v2 }
0x106f   :  { %v674_v1 = vpop.eup %673 }
0x1070   :  { %552 = vrot.lane.b32.xlu2 %v674_v1, %s682_s18 }
0x1071   :  { %v676_v3 = vpop.eup %675 }
0x1072   :  { %v533_v4 = vadd.f32 1.0, %v676_v3 }
0x1074   :  { %677 = vrcp.f32 %v533_v4  ;;  %v545_v10 = vand.u32 2147483648, %v533_v4  ;;  %vm539_vm2 = vweird.f32 %v533_v4  ;;  %v543_v11 = vand.u32 2147483647, %v533_v4 }
0x1076   :  { %v546_v13 = vor.u32 1.1754944e-38, %v545_v10  ;;  %vm544_vm4 = vcmp.eq.f32.partialorder %v543_v11, 8.507059e+37 }
0x107a   :  { %v678_v5 = vpop.eup %677 }
0x107b   :  { %v535_v6 = vmul.f32 %v678_v5, %v533_v4  ;;  %vm540_vm1 = vweird.f32 %v678_v5 }
0x107c   :  { %vm541_vm3 = vmor %vm539_vm2, %vm540_vm1 }
0x107d   :  { %v536_v7 = vsub.f32 1.0, %v535_v6 }
0x107f   :  { %v537_v8 = vmul.f32 %v678_v5, %v536_v7 }
0x1081   :  { %v538_v9 = vadd.f32 %v678_v5, %v537_v8 }
0x1083   :  { %v542_v12 = vsel %vm541_vm3, %v678_v5, %v538_v9 }
0x1084   :  { %v547_v15 = vsel %vm544_vm4, %v546_v13, %v542_v12 }
0x1085   :  { %v550_v17 = vmul.f32 %v547_v15, %v492_v57 }
0x10ca   :  { %v553_v14 = vpop.permute.xlu2 %552 }
0x10cb   :  { %v555_v16 = vmul.f32 %v553_v14, %v547_v15 }
0x10cd   :  { %557 = vrot.lane.b32.xlu0 %v555_v16, %s683_s19 }
0x113f   :  { %v558_v18 = vpop.permute.xlu0 %557 }
0x1140   :  { %v560_v19 = vadd.f32 %v558_v18, %v550_v17 }
0x1142   :  { %679 = vtanh.f32 %v560_v19  ;;  %575 = vrot.lane.b32.xlu0 %v560_v19, %s684_s0 }
0x1148   :  { %v680_v20 = vpop.eup %679 }
0x1149   :  { %563 = vrot.lane.b32.xlu1 %v680_v20, %s682_s18 }
0x11b4   :  { %v576_v21 = vpop.permute.xlu0 %575 }
0x11b5   :  { %578 = vst.msk [vmem:[#allocation3] sm:$0x3] %vm15_vm0, %v576_v21 }
0x11bb   :  { %v564_v22 = vpop.permute.xlu1 %563 }
0x11bc   :  { %v566_v23 = vmul.f32 %v564_v22, %v547_v15 }
0x11be   :  { %568 = vrot.lane.b32.xlu2 %v566_v23, %s683_s19 }
0x1218   :  { %v569_v24 = vpop.permute.xlu2 %568 }
0x1219   :  { %612 = vst.msk [vmem:[%s815_s2 + $0xe] sm:$0x3] %vm15_vm0, %v569_v24 }
0x121a   :  { %573 = vst.msk [vmem:[#allocation2] sm:$0x3] %vm15_vm0, %v569_v24 }

</bundles_post_ra>
